<compile_context>
chip_gen: v5e
topology: v5e:2x2
jax: 0.10.0
libtpu: 0.0.40
codegen_flags: <defaults>
</compile_context>

<pallas_src>
import functools

import jax
import jax.numpy as jnp
from jax.experimental import pallas as pl
from jax.experimental.pallas import tpu as pltpu

# 3x3 stencil tap order (row offset outer, col offset inner) — shared by the weight
# flattening in the wrapper and the im2col slab built in the kernel.
_TAPS = tuple((dh, dw) for dh in (-1, 0, 1) for dw in (-1, 0, 1))


def _resolve_groups(out_ch: int, groups: int = 8) -> int:
    # Mirrors the PyTorch module's group selection logic exactly.
    groups = min(groups, out_ch // 4) if out_ch >= 16 else min(groups, out_ch)
    return max(1, groups)


def _double_conv_kernel(x_ref, w1_ref, g1_ref, b1_ref, w2_ref, g2_ref, b2_ref,
                        masks_ref, gmat_ref, o_ref, col1_ref, col2_ref, *,
                        H, W, C_in, C_out, eps, mm_dtype):
    # x_ref:    (1, C_in, H*W)   lane-dense input for one batch element
    # w*_ref:   (C_out, 9*C_in)  flattened conv weights (tap-major columns)
    # g*/b*:    (C_out, 1)       GroupNorm affine params
    # masks:    (9, H*W)         0/1 border masks per tap (implements zero padding)
    # gmat:     (C_out, C_out)   group-membership matrix scaled by 1/(cpg*H*W)
    # o_ref:    (1, C_out, H*W)  lane-dense output
    # col1/col2: VMEM scratch im2col slabs (9*C_in, H*W) / (9*C_out, H*W)
    HW = H * W

    def im2col(x2d, C, col_ref):
        # Tap (dh, dw) == lane-roll of the flat (C, HW) slab by -(dh*W+dw) + border mask.
        # No per-tap slice+reshape, no halo; writes the (9*C, HW) slab into VMEM scratch.
        for t, (dh, dw) in enumerate(_TAPS):
            s = dh * W + dw
            shifted = x2d if s == 0 else pltpu.roll(x2d, (-s) % HW, axis=1)
            mask = masks_ref[pl.ds(t, 1), :]                      # (1, HW)
            col_ref[pl.ds(t * C, C), :] = shifted * mask
        return col_ref[...]

    def gn_silu(y, gamma, beta):
        # y: (C_out, HW) f32. Per-channel lane reductions + a tiny constant matmul for the
        # group mixing; gamma folded into the rsqrt scale (one FMA per element).
        gmat = gmat_ref[...]                                       # (C_out, C_out)
        mean = jnp.dot(gmat, jnp.sum(y, axis=1, keepdims=True),
                       preferred_element_type=jnp.float32)         # per-channel group mean
        d = y - mean
        var = jnp.dot(gmat, jnp.sum(d * d, axis=1, keepdims=True),
                      preferred_element_type=jnp.float32)          # per-channel group var
        scale = gamma * jax.lax.rsqrt(var + eps)
        z = d * scale + beta
        return z * jax.nn.sigmoid(z)                               # SiLU

    x = x_ref[0].astype(jnp.float32)                               # (C_in, HW)

    # Stage 1: conv (single MXU matmul) -> GN -> SiLU; h stays in VMEM.
    col1 = im2col(x, C_in, col1_ref).astype(mm_dtype)              # (9*C_in, HW)
    y1 = jnp.dot(w1_ref[...].astype(mm_dtype), col1,
                 preferred_element_type=jnp.float32)               # (C_out, HW)
    h = gn_silu(y1, g1_ref[...], b1_ref[...])

    # Stage 2.
    col2 = im2col(h, C_out, col2_ref).astype(mm_dtype)             # (9*C_out, HW)
    y2 = jnp.dot(w2_ref[...].astype(mm_dtype), col2,
                 preferred_element_type=jnp.float32)               # (C_out, HW)
    z = gn_silu(y2, g2_ref[...], b2_ref[...])

    o_ref[0] = z.astype(o_ref.dtype)                               # lane-dense store


def double_conv_forward(x, params, groups, eps=1e-5, use_bf16_matmul=False):
    """(Conv3x3 pad=1 no-bias -> GroupNorm -> SiLU) x 2, fused into one pallas_call."""
    N, C_in, H, W = x.shape
    C_out = params["w1"].shape[0]
    HW = H * W
    assert C_out % groups == 0

    # Lane-dense activation layout (N, C, H*W); reshape back to NCHW at the end (free).
    x2d = x.reshape(N, C_in, HW)

    # Flatten OIHW weights to (C_out, 9*C) with tap-major column order (t*C + c),
    # matching the im2col slab built in the kernel.
    def flatten_w(w):
        co, ci = w.shape[0], w.shape[1]
        return jnp.transpose(w, (0, 2, 3, 1)).reshape(co, 9 * ci).astype(jnp.float32)

    w1 = flatten_w(params["w1"])
    w2 = flatten_w(params["w2"])
    g1 = params["g1"].reshape(C_out, 1).astype(jnp.float32)
    b1 = params["b1"].reshape(C_out, 1).astype(jnp.float32)
    g2 = params["g2"].reshape(C_out, 1).astype(jnp.float32)
    b2 = params["b2"].reshape(C_out, 1).astype(jnp.float32)

    # Border masks per 3x3 tap over the flattened H*W lane axis (zero "same" padding).
    pos = jnp.arange(HW, dtype=jnp.int32)
    r, c = pos // W, pos % W
    masks = jnp.stack(
        [((r + dh >= 0) & (r + dh < H) & (c + dw >= 0) & (c + dw < W))
         for dh, dw in _TAPS], axis=0).astype(jnp.float32)          # (9, HW)

    # GroupNorm mixing matrix: (gmat @ per_channel_sum) == per-channel group mean.
    cpg = C_out // groups
    ch = jnp.arange(C_out, dtype=jnp.int32)
    gmat = ((ch[:, None] // cpg) == (ch[None, :] // cpg)).astype(jnp.float32)
    gmat = gmat / float(cpg * HW)                                   # (C_out, C_out)

    mm_dtype = jnp.bfloat16 if use_bf16_matmul else jnp.float32

    kernel = functools.partial(_double_conv_kernel, H=H, W=W, C_in=C_in,
                               C_out=C_out, eps=eps, mm_dtype=mm_dtype)

    out = pl.pallas_call(
        kernel,
        out_shape=jax.ShapeDtypeStruct((N, C_out, HW), x.dtype),
        grid=(N,),
        in_specs=[
            pl.BlockSpec((1, C_in, HW), lambda n: (n, 0, 0)),
            pl.BlockSpec((C_out, 9 * C_in), lambda n: (0, 0)),
            pl.BlockSpec((C_out, 1), lambda n: (0, 0)),
            pl.BlockSpec((C_out, 1), lambda n: (0, 0)),
            pl.BlockSpec((C_out, 9 * C_out), lambda n: (0, 0)),
            pl.BlockSpec((C_out, 1), lambda n: (0, 0)),
            pl.BlockSpec((C_out, 1), lambda n: (0, 0)),
            pl.BlockSpec((9, HW), lambda n: (0, 0)),
            pl.BlockSpec((C_out, C_out), lambda n: (0, 0)),
        ],
        out_specs=pl.BlockSpec((1, C_out, HW), lambda n: (n, 0, 0)),
        scratch_shapes=[
            pltpu.VMEM((9 * C_in, HW), jnp.float32),    # stage-1 im2col slab
            pltpu.VMEM((9 * C_out, HW), jnp.float32),   # stage-2 im2col slab
        ],
        compiler_params=pltpu.CompilerParams(
            dimension_semantics=("parallel",),           # batch axis -> both v7x TCs
            # TODO(synk): for realistic UNet shapes (e.g. C=256, 64x64) re-derive this for
            # v7x's 64 MiB VMEM and add an H-tile grid axis with partial-sum GN stats.
            vmem_limit_bytes=32 * 1024 * 1024,
        ),
    )(x2d, w1, g1, b1, w2, g2, b2, masks, gmat)

    return out.reshape(N, C_out, H, W)


def double_conv_reference(x, params, groups, eps=1e-5):
    """Pure-JAX reference matching PyTorch semantics (for verification)."""
    def conv(x, w):
        return jax.lax.conv_general_dilated(
            x, w, window_strides=(1, 1), padding=((1, 1), (1, 1)),
            dimension_numbers=("NCHW", "OIHW", "NCHW"))

    def gn(x, g, b):
        N, C, H, W = x.shape
        xg = x.reshape(N, groups, -1)
        mean = xg.mean(-1, keepdims=True)
        var = ((xg - mean) ** 2).mean(-1, keepdims=True)
        xg = (xg - mean) / jnp.sqrt(var + eps)
        x = xg.reshape(N, C, H, W)
        return x * g[None, :, None, None] + b[None, :, None, None]

    def silu(x):
        return x * jax.nn.sigmoid(x)

    h = silu(gn(conv(x, params["w1"]), params["g1"], params["b1"]))
    return silu(gn(conv(h, params["w2"]), params["g2"], params["b2"]))


if __name__ == "__main__":
    # Small shapes consistent with the module: N=2, in_ch=4, out_ch=16, 16x16 spatial.
    N, in_ch, out_ch, H, W = 2, 4, 16, 16, 16
    groups = _resolve_groups(out_ch, 8)   # -> 4

    key = jax.random.PRNGKey(0)
    k_x, k_w1, k_w2, k_g1, k_b1, k_g2, k_b2 = jax.random.split(key, 7)

    x = jax.random.normal(k_x, (N, in_ch, H, W), dtype=jnp.float32)

    # Deterministic synthetic weights (kaiming-like scale); non-trivial GN affine params
    # to exercise the folded scale/bias path.
    fan1 = in_ch * 9
    fan2 = out_ch * 9
    params = {
        "w1": jax.random.normal(k_w1, (out_ch, in_ch, 3, 3), jnp.float32) * (2.0 / fan1) ** 0.5,
        "g1": 1.0 + 0.1 * jax.random.normal(k_g1, (out_ch,), jnp.float32),
        "b1": 0.1 * jax.random.normal(k_b1, (out_ch,), jnp.float32),
        "w2": jax.random.normal(k_w2, (out_ch, out_ch, 3, 3), jnp.float32) * (2.0 / fan2) ** 0.5,
        "g2": 1.0 + 0.1 * jax.random.normal(k_g2, (out_ch,), jnp.float32),
        "b2": 0.1 * jax.random.normal(k_b2, (out_ch,), jnp.float32),
    }

    out = jax.block_until_ready(double_conv_forward(x, params, groups))
    ref = jax.block_until_ready(double_conv_reference(x, params, groups))

    assert out.shape == (N, out_ch, H, W), out.shape
    max_err = float(jnp.max(jnp.abs(out - ref)))
    assert jnp.allclose(out, ref, atol=1e-4, rtol=1e-4), max_err

    print("KERNEL_OK")
</pallas_src>

<mosaic_0001>
module attributes {stable_mosaic.version = 11 : i64} {
  func.func @_double_conv_kernel(%arg0: i32, %arg1: memref<1x4x256xf32, #tpu.memory_space<vmem>>, %arg2: memref<16x36xf32, #tpu.memory_space<vmem>>, %arg3: memref<16x1xf32, #tpu.memory_space<vmem>>, %arg4: memref<16x1xf32, #tpu.memory_space<vmem>>, %arg5: memref<16x144xf32, #tpu.memory_space<vmem>>, %arg6: memref<16x1xf32, #tpu.memory_space<vmem>>, %arg7: memref<16x1xf32, #tpu.memory_space<vmem>>, %arg8: memref<9x256xf32, #tpu.memory_space<vmem>>, %arg9: memref<16x16xf32, #tpu.memory_space<vmem>>, %arg10: memref<1x16x256xf32, #tpu.memory_space<vmem>>, %arg11: memref<36x256xf32, #tpu.memory_space<vmem>>, %arg12: memref<144x256xf32, #tpu.memory_space<vmem>>) attributes {dimension_semantics = [#tpu.dimension_semantics<parallel>], iteration_bounds = array<i64: 2>, scalar_prefetch = 0 : i64, scratch_operands = 2 : i64, tpu.core_type = #tpu.core_type<tc>, window_params = [{transform_indices = @transform_0, window_bounds = array<i64: 1, 4, 256>}, {pipeline_mode = #tpu.pipeline_mode<synchronous>, transform_indices = @transform_1, window_bounds = array<i64: 16, 36>}, {pipeline_mode = #tpu.pipeline_mode<synchronous>, transform_indices = @transform_2, window_bounds = array<i64: 16, 1>}, {pipeline_mode = #tpu.pipeline_mode<synchronous>, transform_indices = @transform_3, window_bounds = array<i64: 16, 1>}, {pipeline_mode = #tpu.pipeline_mode<synchronous>, transform_indices = @transform_4, window_bounds = array<i64: 16, 144>}, {pipeline_mode = #tpu.pipeline_mode<synchronous>, transform_indices = @transform_5, window_bounds = array<i64: 16, 1>}, {pipeline_mode = #tpu.pipeline_mode<synchronous>, transform_indices = @transform_6, window_bounds = array<i64: 16, 1>}, {pipeline_mode = #tpu.pipeline_mode<synchronous>, transform_indices = @transform_7, window_bounds = array<i64: 9, 256>}, {pipeline_mode = #tpu.pipeline_mode<synchronous>, transform_indices = @transform_8, window_bounds = array<i64: 16, 16>}, {transform_indices = @transform_9, window_bounds = array<i64: 1, 16, 256>}]} {
    %c0 = arith.constant 0 : index
    %c0_0 = arith.constant 0 : index
    %c0_1 = arith.constant 0 : index
    %0 = vector.load %arg1[%c0, %c0_0, %c0_1] : memref<1x4x256xf32, #tpu.memory_space<vmem>>, vector<1x4x256xf32>
    %1 = vector.shape_cast %0 : vector<1x4x256xf32> to vector<4x256xf32>
    %c17_i32 = arith.constant 17 : i32
    %2 = tpu.dynamic_rotate %1 by %c17_i32 dim 1 : vector<4x256xf32>, i32 -> vector<4x256xf32>
    %c0_2 = arith.constant 0 : index
    %c0_3 = arith.constant 0 : index
    %3 = vector.load %arg8[%c0_2, %c0_3] : memref<9x256xf32, #tpu.memory_space<vmem>>, vector<1x256xf32>
    %4 = vector.broadcast %3 : vector<1x256xf32> to vector<4x256xf32>
    %5 = arith.mulf %2, %4 : vector<4x256xf32>
    %c0_4 = arith.constant 0 : index
    %c0_5 = arith.constant 0 : index
    %6 = vector.load %arg11[%c0_4, %c0_5] : memref<36x256xf32, #tpu.memory_space<vmem>>, vector<4x256xf32>
    tpu.vector_store %arg11[%c0_4, %c0_5], %5 {strides = array<i32>} : memref<36x256xf32, #tpu.memory_space<vmem>>, vector<4x256xf32>,
    %c16_i32 = arith.constant 16 : i32
    %7 = tpu.dynamic_rotate %1 by %c16_i32 dim 1 : vector<4x256xf32>, i32 -> vector<4x256xf32>
    %c1 = arith.constant 1 : index
    %c0_6 = arith.constant 0 : index
    %8 = vector.load %arg8[%c1, %c0_6] : memref<9x256xf32, #tpu.memory_space<vmem>>, vector<1x256xf32>
    %9 = vector.broadcast %8 : vector<1x256xf32> to vector<4x256xf32>
    %10 = arith.mulf %7, %9 : vector<4x256xf32>
    %c4 = arith.constant 4 : index
    %c0_7 = arith.constant 0 : index
    %11 = vector.load %arg11[%c4, %c0_7] : memref<36x256xf32, #tpu.memory_space<vmem>>, vector<4x256xf32>
    tpu.vector_store %arg11[%c4, %c0_7], %10 {strides = array<i32>} : memref<36x256xf32, #tpu.memory_space<vmem>>, vector<4x256xf32>,
    %c15_i32 = arith.constant 15 : i32
    %12 = tpu.dynamic_rotate %1 by %c15_i32 dim 1 : vector<4x256xf32>, i32 -> vector<4x256xf32>
    %c2 = arith.constant 2 : index
    %c0_8 = arith.constant 0 : index
    %13 = vector.load %arg8[%c2, %c0_8] : memref<9x256xf32, #tpu.memory_space<vmem>>, vector<1x256xf32>
    %14 = vector.broadcast %13 : vector<1x256xf32> to vector<4x256xf32>
    %15 = arith.mulf %12, %14 : vector<4x256xf32>
    %c8 = arith.constant 8 : index
    %c0_9 = arith.constant 0 : index
    %16 = vector.load %arg11[%c8, %c0_9] : memref<36x256xf32, #tpu.memory_space<vmem>>, vector<4x256xf32>
    tpu.vector_store %arg11[%c8, %c0_9], %15 {strides = array<i32>} : memref<36x256xf32, #tpu.memory_space<vmem>>, vector<4x256xf32>,
    %c1_i32 = arith.constant 1 : i32
    %17 = tpu.dynamic_rotate %1 by %c1_i32 dim 1 : vector<4x256xf32>, i32 -> vector<4x256xf32>
    %c3 = arith.constant 3 : index
    %c0_10 = arith.constant 0 : index
    %18 = vector.load %arg8[%c3, %c0_10] : memref<9x256xf32, #tpu.memory_space<vmem>>, vector<1x256xf32>
    %19 = vector.broadcast %18 : vector<1x256xf32> to vector<4x256xf32>
    %20 = arith.mulf %17, %19 : vector<4x256xf32>
    %c12 = arith.constant 12 : index
    %c0_11 = arith.constant 0 : index
    %21 = vector.load %arg11[%c12, %c0_11] : memref<36x256xf32, #tpu.memory_space<vmem>>, vector<4x256xf32>
    tpu.vector_store %arg11[%c12, %c0_11], %20 {strides = array<i32>} : memref<36x256xf32, #tpu.memory_space<vmem>>, vector<4x256xf32>,
    %c4_12 = arith.constant 4 : index
    %c0_13 = arith.constant 0 : index
    %22 = vector.load %arg8[%c4_12, %c0_13] : memref<9x256xf32, #tpu.memory_space<vmem>>, vector<1x256xf32>
    %23 = vector.broadcast %22 : vector<1x256xf32> to vector<4x256xf32>
    %24 = arith.mulf %1, %23 : vector<4x256xf32>
    %c16 = arith.constant 16 : index
    %c0_14 = arith.constant 0 : index
    %25 = vector.load %arg11[%c16, %c0_14] : memref<36x256xf32, #tpu.memory_space<vmem>>, vector<4x256xf32>
    tpu.vector_store %arg11[%c16, %c0_14], %24 {strides = array<i32>} : memref<36x256xf32, #tpu.memory_space<vmem>>, vector<4x256xf32>,
    %c255_i32 = arith.constant 255 : i32
    %26 = tpu.dynamic_rotate %1 by %c255_i32 dim 1 : vector<4x256xf32>, i32 -> vector<4x256xf32>
    %c5 = arith.constant 5 : index
    %c0_15 = arith.constant 0 : index
    %27 = vector.load %arg8[%c5, %c0_15] : memref<9x256xf32, #tpu.memory_space<vmem>>, vector<1x256xf32>
    %28 = vector.broadcast %27 : vector<1x256xf32> to vector<4x256xf32>
    %29 = arith.mulf %26, %28 : vector<4x256xf32>
    %c20 = arith.constant 20 : index
    %c0_16 = arith.constant 0 : index
    %30 = vector.load %arg11[%c20, %c0_16] : memref<36x256xf32, #tpu.memory_space<vmem>>, vector<4x256xf32>
    tpu.vector_store %arg11[%c20, %c0_16], %29 {strides = array<i32>} : memref<36x256xf32, #tpu.memory_space<vmem>>, vector<4x256xf32>,
    %c241_i32 = arith.constant 241 : i32
    %31 = tpu.dynamic_rotate %1 by %c241_i32 dim 1 : vector<4x256xf32>, i32 -> vector<4x256xf32>
    %c6 = arith.constant 6 : index
    %c0_17 = arith.constant 0 : index
    %32 = vector.load %arg8[%c6, %c0_17] : memref<9x256xf32, #tpu.memory_space<vmem>>, vector<1x256xf32>
    %33 = vector.broadcast %32 : vector<1x256xf32> to vector<4x256xf32>
    %34 = arith.mulf %31, %33 : vector<4x256xf32>
    %c24 = arith.constant 24 : index
    %c0_18 = arith.constant 0 : index
    %35 = vector.load %arg11[%c24, %c0_18] : memref<36x256xf32, #tpu.memory_space<vmem>>, vector<4x256xf32>
    tpu.vector_store %arg11[%c24, %c0_18], %34 {strides = array<i32>} : memref<36x256xf32, #tpu.memory_space<vmem>>, vector<4x256xf32>,
    %c240_i32 = arith.constant 240 : i32
    %36 = tpu.dynamic_rotate %1 by %c240_i32 dim 1 : vector<4x256xf32>, i32 -> vector<4x256xf32>
    %c7 = arith.constant 7 : index
    %c0_19 = arith.constant 0 : index
    %37 = vector.load %arg8[%c7, %c0_19] : memref<9x256xf32, #tpu.memory_space<vmem>>, vector<1x256xf32>
    %38 = vector.broadcast %37 : vector<1x256xf32> to vector<4x256xf32>
    %39 = arith.mulf %36, %38 : vector<4x256xf32>
    %c28 = arith.constant 28 : index
    %c0_20 = arith.constant 0 : index
    %40 = vector.load %arg11[%c28, %c0_20] : memref<36x256xf32, #tpu.memory_space<vmem>>, vector<4x256xf32>
    tpu.vector_store %arg11[%c28, %c0_20], %39 {strides = array<i32>} : memref<36x256xf32, #tpu.memory_space<vmem>>, vector<4x256xf32>,
    %c239_i32 = arith.constant 239 : i32
    %41 = tpu.dynamic_rotate %1 by %c239_i32 dim 1 : vector<4x256xf32>, i32 -> vector<4x256xf32>
    %c8_21 = arith.constant 8 : index
    %c0_22 = arith.constant 0 : index
    %42 = vector.load %arg8[%c8_21, %c0_22] : memref<9x256xf32, #tpu.memory_space<vmem>>, vector<1x256xf32>
    %43 = vector.broadcast %42 : vector<1x256xf32> to vector<4x256xf32>
    %44 = arith.mulf %41, %43 : vector<4x256xf32>
    %c32 = arith.constant 32 : index
    %c0_23 = arith.constant 0 : index
    %45 = vector.load %arg11[%c32, %c0_23] : memref<36x256xf32, #tpu.memory_space<vmem>>, vector<4x256xf32>
    tpu.vector_store %arg11[%c32, %c0_23], %44 {strides = array<i32>} : memref<36x256xf32, #tpu.memory_space<vmem>>, vector<4x256xf32>,
    %c0_24 = arith.constant 0 : index
    %c0_25 = arith.constant 0 : index
    %46 = vector.load %arg11[%c0_24, %c0_25] : memref<36x256xf32, #tpu.memory_space<vmem>>, vector<36x256xf32>
    %c0_26 = arith.constant 0 : index
    %c0_27 = arith.constant 0 : index
    %47 = vector.load %arg2[%c0_26, %c0_27] : memref<16x36xf32, #tpu.memory_space<vmem>>, vector<16x36xf32>
    %cst = arith.constant dense<0.000000e+00> : vector<16x256xf32>
    %48 = tpu.matmul %47, %46, %cst {dimension_numbers = #tpu.dot_dimension_numbers<[1], [0], [0], [1], [0, 0, 1, 1], [], []>} : vector<16x36xf32>, vector<36x256xf32>, vector<16x256xf32> -> vector<16x256xf32>
    %c0_28 = arith.constant 0 : index
    %c0_29 = arith.constant 0 : index
    %49 = vector.load %arg3[%c0_28, %c0_29] : memref<16x1xf32, #tpu.memory_space<vmem>>, vector<16x1xf32>
    %c0_30 = arith.constant 0 : index
    %c0_31 = arith.constant 0 : index
    %50 = vector.load %arg4[%c0_30, %c0_31] : memref<16x1xf32, #tpu.memory_space<vmem>>, vector<16x1xf32>
    %c0_32 = arith.constant 0 : index
    %c0_33 = arith.constant 0 : index
    %51 = vector.load %arg9[%c0_32, %c0_33] : memref<16x16xf32, #tpu.memory_space<vmem>>, vector<16x16xf32>
    %cst_34 = arith.constant dense<0.000000e+00> : vector<16xf32>
    %52 = vector.multi_reduction <add>, %48, %cst_34 [1] : vector<16x256xf32> to vector<16xf32>
    %53 = vector.shape_cast %52 : vector<16xf32> to vector<16x1xf32>
    %cst_35 = arith.constant dense<0.000000e+00> : vector<16x1xf32>
    %54 = tpu.matmul %51, %53, %cst_35 {dimension_numbers = #tpu.dot_dimension_numbers<[1], [0], [0], [1], [0, 0, 1, 1], [], []>} : vector<16x16xf32>, vector<16x1xf32>, vector<16x1xf32> -> vector<16x1xf32>
    %55 = vector.broadcast %54 : vector<16x1xf32> to vector<16x256xf32>
    %56 = arith.subf %48, %55 : vector<16x256xf32>
    %57 = arith.mulf %56, %56 : vector<16x256xf32>
    %cst_36 = arith.constant dense<0.000000e+00> : vector<16xf32>
    %58 = vector.multi_reduction <add>, %57, %cst_36 [1] : vector<16x256xf32> to vector<16xf32>
    %59 = vector.shape_cast %58 : vector<16xf32> to vector<16x1xf32>
    %cst_37 = arith.constant dense<0.000000e+00> : vector<16x1xf32>
    %60 = tpu.matmul %51, %59, %cst_37 {dimension_numbers = #tpu.dot_dimension_numbers<[1], [0], [0], [1], [0, 0, 1, 1], [], []>} : vector<16x16xf32>, vector<16x1xf32>, vector<16x1xf32> -> vector<16x1xf32>
    %cst_38 = arith.constant 9.99999974E-6 : f32
    %61 = vector.broadcast %cst_38 : f32 to vector<16x1xf32>
    %62 = arith.addf %60, %61 : vector<16x1xf32>
    %63 = math.rsqrt %62 : vector<16x1xf32>
    %64 = arith.mulf %49, %63 : vector<16x1xf32>
    %65 = vector.broadcast %64 : vector<16x1xf32> to vector<16x256xf32>
    %66 = arith.mulf %56, %65 : vector<16x256xf32>
    %67 = vector.broadcast %50 : vector<16x1xf32> to vector<16x256xf32>
    %68 = arith.addf %66, %67 : vector<16x256xf32>
    %69 = arith.negf %68 : vector<16x256xf32>
    %70 = math.exp %69 : vector<16x256xf32>
    %cst_39 = arith.constant 1.000000e+00 : f32
    %71 = vector.broadcast %cst_39 : f32 to vector<16x256xf32>
    %72 = arith.addf %71, %70 : vector<16x256xf32>
    %73 = arith.divf %71, %72 : vector<16x256xf32>
    %74 = arith.mulf %68, %73 : vector<16x256xf32>
    %c17_i32_40 = arith.constant 17 : i32
    %75 = tpu.dynamic_rotate %74 by %c17_i32_40 dim 1 : vector<16x256xf32>, i32 -> vector<16x256xf32>
    %c0_41 = arith.constant 0 : index
    %c0_42 = arith.constant 0 : index
    %76 = vector.load %arg8[%c0_41, %c0_42] : memref<9x256xf32, #tpu.memory_space<vmem>>, vector<1x256xf32>
    %77 = vector.broadcast %76 : vector<1x256xf32> to vector<16x256xf32>
    %78 = arith.mulf %75, %77 : vector<16x256xf32>
    %c0_43 = arith.constant 0 : index
    %c0_44 = arith.constant 0 : index
    %79 = vector.load %arg12[%c0_43, %c0_44] : memref<144x256xf32, #tpu.memory_space<vmem>>, vector<16x256xf32>
    tpu.vector_store %arg12[%c0_43, %c0_44], %78 {strides = array<i32>} : memref<144x256xf32, #tpu.memory_space<vmem>>, vector<16x256xf32>,
    %c16_i32_45 = arith.constant 16 : i32
    %80 = tpu.dynamic_rotate %74 by %c16_i32_45 dim 1 : vector<16x256xf32>, i32 -> vector<16x256xf32>
    %c1_46 = arith.constant 1 : index
    %c0_47 = arith.constant 0 : index
    %81 = vector.load %arg8[%c1_46, %c0_47] : memref<9x256xf32, #tpu.memory_space<vmem>>, vector<1x256xf32>
    %82 = vector.broadcast %81 : vector<1x256xf32> to vector<16x256xf32>
    %83 = arith.mulf %80, %82 : vector<16x256xf32>
    %c16_48 = arith.constant 16 : index
    %c0_49 = arith.constant 0 : index
    %84 = vector.load %arg12[%c16_48, %c0_49] : memref<144x256xf32, #tpu.memory_space<vmem>>, vector<16x256xf32>
    tpu.vector_store %arg12[%c16_48, %c0_49], %83 {strides = array<i32>} : memref<144x256xf32, #tpu.memory_space<vmem>>, vector<16x256xf32>,
    %c15_i32_50 = arith.constant 15 : i32
    %85 = tpu.dynamic_rotate %74 by %c15_i32_50 dim 1 : vector<16x256xf32>, i32 -> vector<16x256xf32>
    %c2_51 = arith.constant 2 : index
    %c0_52 = arith.constant 0 : index
    %86 = vector.load %arg8[%c2_51, %c0_52] : memref<9x256xf32, #tpu.memory_space<vmem>>, vector<1x256xf32>
    %87 = vector.broadcast %86 : vector<1x256xf32> to vector<16x256xf32>
    %88 = arith.mulf %85, %87 : vector<16x256xf32>
    %c32_53 = arith.constant 32 : index
    %c0_54 = arith.constant 0 : index
    %89 = vector.load %arg12[%c32_53, %c0_54] : memref<144x256xf32, #tpu.memory_space<vmem>>, vector<16x256xf32>
    tpu.vector_store %arg12[%c32_53, %c0_54], %88 {strides = array<i32>} : memref<144x256xf32, #tpu.memory_space<vmem>>, vector<16x256xf32>,
    %c1_i32_55 = arith.constant 1 : i32
    %90 = tpu.dynamic_rotate %74 by %c1_i32_55 dim 1 : vector<16x256xf32>, i32 -> vector<16x256xf32>
    %c3_56 = arith.constant 3 : index
    %c0_57 = arith.constant 0 : index
    %91 = vector.load %arg8[%c3_56, %c0_57] : memref<9x256xf32, #tpu.memory_space<vmem>>, vector<1x256xf32>
    %92 = vector.broadcast %91 : vector<1x256xf32> to vector<16x256xf32>
    %93 = arith.mulf %90, %92 : vector<16x256xf32>
    %c48 = arith.constant 48 : index
    %c0_58 = arith.constant 0 : index
    %94 = vector.load %arg12[%c48, %c0_58] : memref<144x256xf32, #tpu.memory_space<vmem>>, vector<16x256xf32>
    tpu.vector_store %arg12[%c48, %c0_58], %93 {strides = array<i32>} : memref<144x256xf32, #tpu.memory_space<vmem>>, vector<16x256xf32>,
    %c4_59 = arith.constant 4 : index
    %c0_60 = arith.constant 0 : index
    %95 = vector.load %arg8[%c4_59, %c0_60] : memref<9x256xf32, #tpu.memory_space<vmem>>, vector<1x256xf32>
    %96 = vector.broadcast %95 : vector<1x256xf32> to vector<16x256xf32>
    %97 = arith.mulf %74, %96 : vector<16x256xf32>
    %c64 = arith.constant 64 : index
    %c0_61 = arith.constant 0 : index
    %98 = vector.load %arg12[%c64, %c0_61] : memref<144x256xf32, #tpu.memory_space<vmem>>, vector<16x256xf32>
    tpu.vector_store %arg12[%c64, %c0_61], %97 {strides = array<i32>} : memref<144x256xf32, #tpu.memory_space<vmem>>, vector<16x256xf32>,
    %c255_i32_62 = arith.constant 255 : i32
    %99 = tpu.dynamic_rotate %74 by %c255_i32_62 dim 1 : vector<16x256xf32>, i32 -> vector<16x256xf32>
    %c5_63 = arith.constant 5 : index
    %c0_64 = arith.constant 0 : index
    %100 = vector.load %arg8[%c5_63, %c0_64] : memref<9x256xf32, #tpu.memory_space<vmem>>, vector<1x256xf32>
    %101 = vector.broadcast %100 : vector<1x256xf32> to vector<16x256xf32>
    %102 = arith.mulf %99, %101 : vector<16x256xf32>
    %c80 = arith.constant 80 : index
    %c0_65 = arith.constant 0 : index
    %103 = vector.load %arg12[%c80, %c0_65] : memref<144x256xf32, #tpu.memory_space<vmem>>, vector<16x256xf32>
    tpu.vector_store %arg12[%c80, %c0_65], %102 {strides = array<i32>} : memref<144x256xf32, #tpu.memory_space<vmem>>, vector<16x256xf32>,
    %c241_i32_66 = arith.constant 241 : i32
    %104 = tpu.dynamic_rotate %74 by %c241_i32_66 dim 1 : vector<16x256xf32>, i32 -> vector<16x256xf32>
    %c6_67 = arith.constant 6 : index
    %c0_68 = arith.constant 0 : index
    %105 = vector.load %arg8[%c6_67, %c0_68] : memref<9x256xf32, #tpu.memory_space<vmem>>, vector<1x256xf32>
    %106 = vector.broadcast %105 : vector<1x256xf32> to vector<16x256xf32>
    %107 = arith.mulf %104, %106 : vector<16x256xf32>
    %c96 = arith.constant 96 : index
    %c0_69 = arith.constant 0 : index
    %108 = vector.load %arg12[%c96, %c0_69] : memref<144x256xf32, #tpu.memory_space<vmem>>, vector<16x256xf32>
    tpu.vector_store %arg12[%c96, %c0_69], %107 {strides = array<i32>} : memref<144x256xf32, #tpu.memory_space<vmem>>, vector<16x256xf32>,
    %c240_i32_70 = arith.constant 240 : i32
    %109 = tpu.dynamic_rotate %74 by %c240_i32_70 dim 1 : vector<16x256xf32>, i32 -> vector<16x256xf32>
    %c7_71 = arith.constant 7 : index
    %c0_72 = arith.constant 0 : index
    %110 = vector.load %arg8[%c7_71, %c0_72] : memref<9x256xf32, #tpu.memory_space<vmem>>, vector<1x256xf32>
    %111 = vector.broadcast %110 : vector<1x256xf32> to vector<16x256xf32>
    %112 = arith.mulf %109, %111 : vector<16x256xf32>
    %c112 = arith.constant 112 : index
    %c0_73 = arith.constant 0 : index
    %113 = vector.load %arg12[%c112, %c0_73] : memref<144x256xf32, #tpu.memory_space<vmem>>, vector<16x256xf32>
    tpu.vector_store %arg12[%c112, %c0_73], %112 {strides = array<i32>} : memref<144x256xf32, #tpu.memory_space<vmem>>, vector<16x256xf32>,
    %c239_i32_74 = arith.constant 239 : i32
    %114 = tpu.dynamic_rotate %74 by %c239_i32_74 dim 1 : vector<16x256xf32>, i32 -> vector<16x256xf32>
    %c8_75 = arith.constant 8 : index
    %c0_76 = arith.constant 0 : index
    %115 = vector.load %arg8[%c8_75, %c0_76] : memref<9x256xf32, #tpu.memory_space<vmem>>, vector<1x256xf32>
    %116 = vector.broadcast %115 : vector<1x256xf32> to vector<16x256xf32>
    %117 = arith.mulf %114, %116 : vector<16x256xf32>
    %c128 = arith.constant 128 : index
    %c0_77 = arith.constant 0 : index
    %118 = vector.load %arg12[%c128, %c0_77] : memref<144x256xf32, #tpu.memory_space<vmem>>, vector<16x256xf32>
    tpu.vector_store %arg12[%c128, %c0_77], %117 {strides = array<i32>} : memref<144x256xf32, #tpu.memory_space<vmem>>, vector<16x256xf32>,
    %c0_78 = arith.constant 0 : index
    %c0_79 = arith.constant 0 : index
    %119 = vector.load %arg12[%c0_78, %c0_79] : memref<144x256xf32, #tpu.memory_space<vmem>>, vector<144x256xf32>
    %c0_80 = arith.constant 0 : index
    %c0_81 = arith.constant 0 : index
    %120 = vector.load %arg5[%c0_80, %c0_81] : memref<16x144xf32, #tpu.memory_space<vmem>>, vector<16x144xf32>
    %cst_82 = arith.constant dense<0.000000e+00> : vector<16x256xf32>
    %121 = tpu.matmul %120, %119, %cst_82 {dimension_numbers = #tpu.dot_dimension_numbers<[1], [0], [0], [1], [0, 0, 1, 1], [], []>} : vector<16x144xf32>, vector<144x256xf32>, vector<16x256xf32> -> vector<16x256xf32>
    %c0_83 = arith.constant 0 : index
    %c0_84 = arith.constant 0 : index
    %122 = vector.load %arg6[%c0_83, %c0_84] : memref<16x1xf32, #tpu.memory_space<vmem>>, vector<16x1xf32>
    %c0_85 = arith.constant 0 : index
    %c0_86 = arith.constant 0 : index
    %123 = vector.load %arg7[%c0_85, %c0_86] : memref<16x1xf32, #tpu.memory_space<vmem>>, vector<16x1xf32>
    %c0_87 = arith.constant 0 : index
    %c0_88 = arith.constant 0 : index
    %124 = vector.load %arg9[%c0_87, %c0_88] : memref<16x16xf32, #tpu.memory_space<vmem>>, vector<16x16xf32>
    %cst_89 = arith.constant dense<0.000000e+00> : vector<16xf32>
    %125 = vector.multi_reduction <add>, %121, %cst_89 [1] : vector<16x256xf32> to vector<16xf32>
    %126 = vector.shape_cast %125 : vector<16xf32> to vector<16x1xf32>
    %cst_90 = arith.constant dense<0.000000e+00> : vector<16x1xf32>
    %127 = tpu.matmul %124, %126, %cst_90 {dimension_numbers = #tpu.dot_dimension_numbers<[1], [0], [0], [1], [0, 0, 1, 1], [], []>} : vector<16x16xf32>, vector<16x1xf32>, vector<16x1xf32> -> vector<16x1xf32>
    %128 = vector.broadcast %127 : vector<16x1xf32> to vector<16x256xf32>
    %129 = arith.subf %121, %128 : vector<16x256xf32>
    %130 = arith.mulf %129, %129 : vector<16x256xf32>
    %cst_91 = arith.constant dense<0.000000e+00> : vector<16xf32>
    %131 = vector.multi_reduction <add>, %130, %cst_91 [1] : vector<16x256xf32> to vector<16xf32>
    %132 = vector.shape_cast %131 : vector<16xf32> to vector<16x1xf32>
    %cst_92 = arith.constant dense<0.000000e+00> : vector<16x1xf32>
    %133 = tpu.matmul %124, %132, %cst_92 {dimension_numbers = #tpu.dot_dimension_numbers<[1], [0], [0], [1], [0, 0, 1, 1], [], []>} : vector<16x16xf32>, vector<16x1xf32>, vector<16x1xf32> -> vector<16x1xf32>
    %cst_93 = arith.constant 9.99999974E-6 : f32
    %134 = vector.broadcast %cst_93 : f32 to vector<16x1xf32>
    %135 = arith.addf %133, %134 : vector<16x1xf32>
    %136 = math.rsqrt %135 : vector<16x1xf32>
    %137 = arith.mulf %122, %136 : vector<16x1xf32>
    %138 = vector.broadcast %137 : vector<16x1xf32> to vector<16x256xf32>
    %139 = arith.mulf %129, %138 : vector<16x256xf32>
    %140 = vector.broadcast %123 : vector<16x1xf32> to vector<16x256xf32>
    %141 = arith.addf %139, %140 : vector<16x256xf32>
    %142 = arith.negf %141 : vector<16x256xf32>
    %143 = math.exp %142 : vector<16x256xf32>
    %cst_94 = arith.constant 1.000000e+00 : f32
    %144 = vector.broadcast %cst_94 : f32 to vector<16x256xf32>
    %145 = arith.addf %144, %143 : vector<16x256xf32>
    %146 = arith.divf %144, %145 : vector<16x256xf32>
    %147 = arith.mulf %141, %146 : vector<16x256xf32>
    %c0_95 = arith.constant 0 : index
    %c0_96 = arith.constant 0 : index
    %c0_97 = arith.constant 0 : index
    %148 = vector.load %arg10[%c0_95, %c0_96, %c0_97] : memref<1x16x256xf32, #tpu.memory_space<vmem>>, vector<1x16x256xf32>
    %149 = vector.shape_cast %148 : vector<1x16x256xf32> to vector<16x256xf32>
    %150 = vector.shape_cast %147 : vector<16x256xf32> to vector<1x16x256xf32>
    tpu.vector_store %arg10[%c0_95, %c0_96, %c0_97], %150 {strides = array<i32>} : memref<1x16x256xf32, #tpu.memory_space<vmem>>, vector<1x16x256xf32>,
    return
  }
  func.func @transform_0(%arg0: i32) -> (i32, i32, i32) {
    %c0_i32 = arith.constant 0 : i32
    %c0_i32_0 = arith.constant 0 : i32
    %c0_i32_1 = arith.constant 0 : i32
    return %arg0, %c0_i32, %c0_i32_0 : i32, i32, i32
  }
  func.func @transform_1(%arg0: i32) -> (i32, i32) {
    %c0_i32 = arith.constant 0 : i32
    %c0_i32_0 = arith.constant 0 : i32
    %c0_i32_1 = arith.constant 0 : i32
    return %c0_i32, %c0_i32_0 : i32, i32
  }
  func.func @transform_2(%arg0: i32) -> (i32, i32) {
    %c0_i32 = arith.constant 0 : i32
    %c0_i32_0 = arith.constant 0 : i32
    %c0_i32_1 = arith.constant 0 : i32
    return %c0_i32, %c0_i32_0 : i32, i32
  }
  func.func @transform_3(%arg0: i32) -> (i32, i32) {
    %c0_i32 = arith.constant 0 : i32
    %c0_i32_0 = arith.constant 0 : i32
    %c0_i32_1 = arith.constant 0 : i32
    return %c0_i32, %c0_i32_0 : i32, i32
  }
  func.func @transform_4(%arg0: i32) -> (i32, i32) {
    %c0_i32 = arith.constant 0 : i32
    %c0_i32_0 = arith.constant 0 : i32
    %c0_i32_1 = arith.constant 0 : i32
    return %c0_i32, %c0_i32_0 : i32, i32
  }
  func.func @transform_5(%arg0: i32) -> (i32, i32) {
    %c0_i32 = arith.constant 0 : i32
    %c0_i32_0 = arith.constant 0 : i32
    %c0_i32_1 = arith.constant 0 : i32
    return %c0_i32, %c0_i32_0 : i32, i32
  }
  func.func @transform_6(%arg0: i32) -> (i32, i32) {
    %c0_i32 = arith.constant 0 : i32
    %c0_i32_0 = arith.constant 0 : i32
    %c0_i32_1 = arith.constant 0 : i32
    return %c0_i32, %c0_i32_0 : i32, i32
  }
  func.func @transform_7(%arg0: i32) -> (i32, i32) {
    %c0_i32 = arith.constant 0 : i32
    %c0_i32_0 = arith.constant 0 : i32
    %c0_i32_1 = arith.constant 0 : i32
    return %c0_i32, %c0_i32_0 : i32, i32
  }
  func.func @transform_8(%arg0: i32) -> (i32, i32) {
    %c0_i32 = arith.constant 0 : i32
    %c0_i32_0 = arith.constant 0 : i32
    %c0_i32_1 = arith.constant 0 : i32
    return %c0_i32, %c0_i32_0 : i32, i32
  }
  func.func @transform_9(%arg0: i32) -> (i32, i32, i32) {
    %c0_i32 = arith.constant 0 : i32
    %c0_i32_0 = arith.constant 0 : i32
    %c0_i32_1 = arith.constant 0 : i32
    return %arg0, %c0_i32, %c0_i32_0 : i32, i32, i32
  }
}

</mosaic_0001>

<bundles_post_ra>
// kernel: tpu_custom_call.1
= control target key start
LH: loop header
LB: loop body
LE: loop exit
PB: predicated region body
PF: predicated region fallthrough
CT: control target
= control target key end

     0   :  { %s2539_s0 = inlined_call_operand.hbm [shape: f32[2,4,256], index: 0, kind: input, shape index: {}]   ;;  %s2540_s1 = inlined_call_operand.hbm [shape: f32[16,36], index: 1, kind: input, shape index: {}]   ;;  %s2541_s2 = inlined_call_operand.vmem [shape: f32[16,1], index: 2, kind: input, shape index: {}]   ;;  %s2542_s3 = inlined_call_operand.vmem [shape: f32[16,1], index: 3, kind: input, shape index: {}]   ;;  %s2543_s4 = inlined_call_operand.vmem [shape: f32[16,144], index: 4, kind: input, shape index: {}]   ;;  %s2544_s5 = inlined_call_operand.vmem [shape: f32[16,1], index: 5, kind: input, shape index: {}]   ;;  %s2545_s6 = inlined_call_operand.vmem [shape: f32[16,1], index: 6, kind: input, shape index: {}]   ;;  %s2546_s7 = inlined_call_operand.vmem [shape: f32[9,256], index: 7, kind: input, shape index: {}]   ;;  %s2547_s8 = inlined_call_operand.hbm [shape: f32[16,16], index: 8, kind: input, shape index: {}]   ;;  %s2548_s9 = inlined_call_operand.hbm [shape: f32[2,16,256], index: 9, kind: output, shape index: {}]  }
   0x1   :  { %2551 = sst [smem:[#allocation16_spill]] %s2540_s1 }
   0x2   :  { %2552 = sst [smem:[#allocation17_spill]] %s2547_s8 }
   0x3   :  { %14 = vsyncpa [#allocation5], 0 }
   0x4   :  { %16 = vsyncpa [#allocation5 + $0x1], 0 }
   0x5   :  { %17 = vsyncpa [#allocation8], 0 }
   0x6   :  { %18 = vsyncpa [#allocation6], 0 }
   0x7   :  { %20 = vsyncpa [#allocation6 + $0x1], 0  ;;  %s2003_s30 = smov 0   ;;  %s2005_s10 = smov 0  }
   0x8   :  { %s2007_s11 = smov 0   ;;  %s2009_s12 = smov 0  }
   0x9 LB: > { %2553 = sst [smem:[#allocation14_spill]] %s1933_s11  ;;  %s2027_s16 = sadd.s32 4294967295, %s1937_s12   ;;  %s1937_s12 = sphi %s2009_s12, %s2576_s12   ;;  %s1933_s11 = sphi %s2007_s11, %s2573_s11   ;;  %s1929_s10 = sphi %s2005_s10, %s2575_s10   ;;  %s1925_s30 = sphi %s2003_s30, %s2574_s30  }
   0xa   : > { %s2554_s1 = sld [smem:[#allocation16_spill]]  ;;  %p1594_p0 = scmp.ge.s32.totalorder %s1937_s12, 1 }
   0xb   : > { %p47_p1 = scmp.eq.s32.totalorder %s2027_s16, 0  ;;  %p251_p2 = scmp.lt.s32.totalorder %s1937_s12, 3 }
   0xc   : > { %s1939_s18 = smov [#allocation7]   ;;  %s2556_s8 = sld [smem:[#allocation17_spill]] }
   0xd   : > { %p2032_p3 = pnand %p1594_p0, %p251_p2  ;;  %s264_s19 = sshll.u32 %s1939_s18, 4  ;;  %s265_s19 = int_to_ptr.vmem [resolvable:$true] %s264_s19 }
   0xe   : > { %s1940_s23 = smov [#allocation9]   ;;  %s1941_s25 = smov 128  }
   0xf   : > { %p1667_p4 = pneg %p2032_p3  ;;  %s296_s24 = sshll.u32 %s1940_s23, 4  ;;  %s297_s24 = int_to_ptr.vmem [resolvable:$true] %s296_s24 }
  0x10   : > { %s262_s15 = sshll.u32 %s2554_s1, 4  ;;  %s1942_s26 = smov 8   ;;  %s263_s15 = int_to_ptr.hbm [resolvable:$true] %s262_s15 }
  0x11   : > { %p1668_p6 = pnand %p1667_p4, %p47_p1  ;;  %s1593_s27 = sadd.s32 4294967294, %s1937_s12  }
  0x12   : > { %s294_s22 = sshll.u32 %s2556_s8, 4  ;;  %s2046_s28 = sadd.s32 1, %s1937_s12   ;;  %s295_s22 = int_to_ptr.hbm [resolvable:$true] %s294_s22 }
  0x13   : > { %1670 = dma.hbm_to_vmem [thread:$0]  (!%p1668_p6), %s263_s15, 256, %s265_s19, [#allocation8], %s1941_s25, %s1941_s25, %s1942_s26  }
  0x14   : > { %1673 = dma.hbm_to_vmem [thread:$0]  (!%p1668_p6), %s295_s22, 256, %s297_s24, [#allocation8], %s1941_s25, %s1941_s25, %s1942_s26  }
  0x15   : > { %s30_s29 = ssub.s32 %s1937_s12, %s2046_s28  ;;  %s33_s13 = sadd.s32 1, %s1933_s11 }
  0x16   : > { %p31_p7 = scmp.eq.s32.totalorder %s30_s29, 0  ;;  %p40_p8 = scmp.ne.s32.totalorder %s1933_s11, %s1929_s10 }
  0x17   : > { %p41_p9 = scmp.eq.s32.totalorder %s1937_s12, 0  ;;  %p46_p10 = scmp.ne.s32.totalorder %s1929_s10, %s1925_s30 }
  0x18   : > { %s2057_s14 = scalar_select %p31_p7, %s1933_s11, %s33_s13  }
  0x19   : > { %p2059_p11 = por %p41_p9, %p40_p8  ;;  %p2065_p12 = por %p47_p1, %p46_p10 }
  0x1a   : > { %2557 = sst [smem:[#allocation15_spill]] %s2057_s14  ;;  %p238_p13 = scmp.eq.s32.totalorder %s2027_s16, 1 }
  0x1b   : > { %p244_p0 = scmp.eq.s32.totalorder %s1593_s27, 1  ;;  %p1684_p2 = scmp.lt.s32.totalorder %s1937_s12, 2 }
  0x1c   : > { %s310_s19 = sand.u32 1, %s1933_s11   ;;  %p2072_p4 = por %p238_p13, %p40_p8 }
  0x1d   : > { %p2076_p6 = por %p244_p0, %p46_p10  ;;  %s1598_s22 = sshll.u32 %s310_s19, 3 }
  0x1e   : > { %s1653_s23 = sshll.u32 %s1937_s12, 3  ;;  %s314_s29 = scalar_lea.vmem [#allocation4], %s1598_s22 }
  0x1f   : > { %s319_s26 = scalar_lea.hbm %s2539_s0, %s1653_s23  ;;  %s323_s13 = sshll.u32 %s314_s29, 4  ;;  %s324_s13 = int_to_ptr.vmem [resolvable:$true] %s323_s13 }
  0x20   : > { %s321_s1 = sshll.u32 %s319_s26, 4  ;;  %p2086_p7 = pnand %p1684_p2, %p2059_p11  ;;  %s322_s1 = int_to_ptr.hbm [resolvable:$true] %s321_s1 }
  0x21   : > { %s311_s8 = scalar_lea.sflag [#allocation5], %s310_s19  ;;  %s1837_s14 = sshra.s32 %s322_s1, 4  ;;  %s1838_s14 = int_to_ptr.hbm [resolvable:$true] %s1837_s14 }
  0x22   : > { %s1839_s11 = scalar_lea.hbm %s1838_s14, 8  ;;  %p1841_p9 = pneg %p2086_p7 }
  0x23   : > { %p1840_p8 = scmp.ne.s32.totalorder %s1838_s14, %s1839_s11  ;;  %s1844_s24 = scalar_lea.hbm %s2539_s0, 16 }
  0x24   : > { %p1845_p11 = scmp.lt.s32.totalorder %s1838_s14, %s2539_s0  ;;  %p1846_p0 = scmp.lt.s32.totalorder %s1844_s24, %s1839_s11 }
  0x25   : > { %p1842_p10 = pnand %p1841_p9, %p1840_p8 }
  0x26   : > { %p1847_p2 = por %p1846_p0, %p1845_p11 }
  0x27   : > { %p1843_p13 = pneg %p1842_p10 }
  0x29   : > { %p1848_p5 = pnand %p1847_p2, %p1843_p13 }
  0x2b   : > { %1851 = shalt.err (!%p1848_p5)
}
  0x2c   : > { %1677 = dma.hbm_to_vmem [thread:$0]  (!%p2086_p7), %s322_s1, 128, %s324_s13, %s311_s8  }
  0x2d   : > { %332 = sbr.rel (%p2032_p3) target bundleno = 2335 (0x91f), region = 56  ;;  %s2103_s19 = sand.u32 (!%p2032_p3), 1, %s1929_s10  }
  0x2e   : > { %s1602_s26 = sshll.u32 (!%p2032_p3), %s2103_s19, 3  ;;  %s335_s29 = scalar_lea.sflag (!%p2032_p3), [#allocation5], %s2103_s19 }
  0x2f   : > { %s338_s22 = scalar_lea.vmem (!%p2032_p3), [#allocation4], %s1602_s26 }
  0x32   : > { %1912 = dma.done.wait (%p2065_p12), %s335_s29, 128  }
  0x33   : > { %1914 = vsyncadd (%p2065_p12), %s335_s29, 4294967168 }
  0x34   : > { %1916 = dma.done.wait (%p47_p1), [#allocation8], 512  }
  0x35   : > { %1918 = vsyncadd (%p47_p1), [#allocation8], 4294966784  ;;  %v384_v0 = vld [vmem:[%s338_s22] sm:$0xff]  ;;  %s1943_s11 = smov 16   ;;  %vm497_vm0 = vcmask 1043456   ;;  %s1944_s17 = smov 15   ;;  %v395_v26 = vlaneseq }
  0x36   : > { %386 = vst [vmem:[#allocation1] ss:$2 sm:$0xff] %v384_v0  ;;  %v1609_v3 = vld [vmem:[%s2546_s7 + $0x4] ss:$8 sm:$0x3]  ;;  %s1945_s14 = smov 1  }
  0x37   : > { %v495_v6 = vperm.slane %v1609_v3, 1  ;;  %v494_v7 = vperm.slane %v1609_v3, 0  ;;  %s1946_s15 = smov 127   ;;  %s1947_s13 = smov 113   ;;  %v2135_v27 = vand.u32 127, %v395_v26  ;;  %vm625_vm9 = vcmask 293888  }
  0x38   : > { %s1948_s27 = smov 112   ;;  %s1949_s23 = smov 17   ;;  %v1606_v28 = vld [vmem:[%s2546_s7 + $0x1] ss:$8 sm:$0x3]  ;;  %vm2550_vm10 = vcmask 130048  }
  0x39   : > { %v496_v8 = vrot.slane %v495_v6, 4  ;;  %s1950_s24 = smov 111   ;;  %vm419_vm1 = vcmp.lt.s32.totalorder %v2135_v27, 16  ;;  %v425_v29 = vperm.slane %v1606_v28, 0  ;;  %v426_v30 = vperm.slane %v1606_v28, 1  ;;  %s1654_s22 = sshll.u32 %s2027_s16, 5 }
  0x3a   : > { %v1608_v41 = vld [vmem:[%s2546_s7 + $0x3] ss:$8 sm:$0x3]  ;;  %vm471_vm2 = vcmp.lt.s32.totalorder %v2135_v27, 1  ;;  %vm518_vm3 = vcmp.lt.s32.totalorder %v2135_v27, 127  ;;  %vm547_vm4 = vcmp.lt.s32.totalorder %v2135_v27, 113  ;;  %s1497_s25 = scalar_lea.hbm %s2548_s9, %s1654_s22 }
  0x3b   : > { %v498_v11 = vsel %vm497_vm0, %v494_v7, %v496_v8  ;;  %v477_v42 = vperm.slane %v1608_v41, 0  ;;  %v478_v43 = vperm.slane %v1608_v41, 1  ;;  %v1610_v45 = vld [vmem:[%s2546_s7 + $0x5] ss:$8 sm:$0x3]  ;;  %vm570_vm5 = vcmp.lt.s32.totalorder %v2135_v27, 112 }
  0x3c   : > { %v500_v12 = vmul.f32 %v498_v11, %v384_v0  ;;  %v524_v48 = vperm.slane %v1610_v45, 0  ;;  %v525_v49 = vperm.slane %v1610_v45, 1  ;;  %v1611_v61 = vld [vmem:[%s2546_s7 + $0x6] ss:$8 sm:$0x3]  ;;  %vm397_vm6 = vcmp.lt.s32.totalorder %v2135_v27, 17 }
  0x3d   : > { %v387_v1 = vld.sshfl [vmem:[#allocation1] sm:$0xff pattern:$0x75316420]  ;;  %v388_v2 = vld.sshfl [vmem:[#allocation1 + $0x8] sm:$0xff pattern:$0x75316420] }
  0x3e   : > { %410 = vst [vmem:[#allocation1] ss:$2 sm:$0xff] %v384_v0  ;;  %v553_v62 = vperm.slane %v1611_v61, 0  ;;  %v554_v63 = vperm.slane %v1611_v61, 1  ;;  %vm599_vm7 = vcmp.lt.s32.totalorder %v2135_v27, 111  ;;  %vm448_vm8 = vcmp.lt.s32.totalorder %v2135_v27, 15 }
  0x3f   : > { %v1612_v7 = vld [vmem:[%s2546_s7 + $0x7] ss:$8 sm:$0x3]  ;;  %v1163_v27 = vld [vmem:[%s2543_s4 + $0x10] sm:$0xff]  ;;  %s1500_s18 = sshll.u32 %s1497_s25, 4  ;;  %s1486_s26 = scalar_lea.sflag [#allocation6], %s2103_s19  ;;  %s1501_s18 = int_to_ptr.hbm [resolvable:$true] %s1500_s18 }
  0x40   : > { %v576_v8 = vperm.slane %v1612_v7, 0 }
  0x45   : > { %v411_v4 = vld.sshfl [vmem:[#allocation1] sm:$0xff pattern:$0x75316420]  ;;  %v412_v5 = vld.sshfl [vmem:[#allocation1 + $0x8] sm:$0xff pattern:$0x75316420] }
  0x46   : > { %439 = vst [vmem:[#allocation1] ss:$2 sm:$0xff] %v384_v0  ;;  %415 = vrot.lane.b32.xlu1 %v411_v4, %s1943_s11  ;;  %417 = vrot.lane.b32.xlu2 %v412_v5, %s1943_s11 }
  0x4d   : > { %v440_v9 = vld.sshfl [vmem:[#allocation1] sm:$0xff pattern:$0x75316420]  ;;  %v441_v10 = vld.sshfl [vmem:[#allocation1 + $0x8] sm:$0xff pattern:$0x75316420] }
  0x4e   : > { %444 = vrot.lane.b32.xlu0 %v440_v9, %s1944_s17  ;;  %462 = vst [vmem:[#allocation1] ss:$2 sm:$0xff] %v384_v0  ;;  %v577_v9 = vperm.slane %v1612_v7, 1 }
  0x55   : > { %v463_v13 = vld.sshfl [vmem:[#allocation1] sm:$0xff pattern:$0x75316420]  ;;  %v464_v14 = vld.sshfl [vmem:[#allocation1 + $0x8] sm:$0xff pattern:$0x75316420] }
  0x56   : > { %469 = vrot.lane.b32.xlu0 %v464_v14, %s1945_s14  ;;  %502 = vst [vmem:[#allocation1] ss:$2 sm:$0xff] %v500_v12  ;;  %467 = vrot.lane.b32.xlu2 %v463_v13, %s1945_s14 }
  0x5d   : > { %v503_v15 = vld.sshfl [vmem:[#allocation1] sm:$0xff pattern:$0x75316420]  ;;  %v504_v16 = vld.sshfl [vmem:[#allocation1 + $0x8] sm:$0xff pattern:$0x75316420] }
  0x5e   : > { %509 = vst [vmem:[#allocation1] ss:$2 sm:$0xff] %v384_v0 }
  0x5f   : > { %507 = vst [vmem:[#allocation2 + $0x48] sm:$0xf] %v503_v15 }
  0x60   : > { %508 = vst [vmem:[#allocation2 + $0x28] sm:$0xf] %v504_v16  ;;  %v400_v16 = vld [vmem:[%s2546_s7] ss:$8 sm:$0x3] }
  0x65   : > { %v510_v17 = vld.sshfl [vmem:[#allocation1] sm:$0xff pattern:$0x75316420]  ;;  %v511_v18 = vld.sshfl [vmem:[#allocation1 + $0x8] sm:$0xff pattern:$0x75316420] }
  0x66   : > { %538 = vst [vmem:[#allocation1] ss:$2 sm:$0xff] %v384_v0  ;;  %514 = vrot.lane.b32.xlu2 %v510_v17, %s1946_s15  ;;  %v1613_v17 = vld [vmem:[%s2546_s7 + $0x10] ss:$8 sm:$0x3] }
  0x6d   : > { %v539_v19 = vld.sshfl [vmem:[#allocation1] sm:$0xff pattern:$0x75316420]  ;;  %v540_v20 = vld.sshfl [vmem:[#allocation1 + $0x8] sm:$0xff pattern:$0x75316420] }
  0x6e   : > { %543 = vrot.lane.b32.xlu0 %v539_v19, %s1947_s13  ;;  %545 = vrot.lane.b32.xlu1 %v540_v20, %s1947_s13  ;;  %561 = vst [vmem:[#allocation1] ss:$2 sm:$0xff] %v384_v0 }
  0x6f   : > { %516 = vrot.lane.b32.xlu2 %v511_v18, %s1946_s15 }
  0x75   : > { %v562_v21 = vld.sshfl [vmem:[#allocation1] sm:$0xff pattern:$0x75316420]  ;;  %v563_v22 = vld.sshfl [vmem:[#allocation1 + $0x8] sm:$0xff pattern:$0x75316420] }
  0x76   : > { %566 = vrot.lane.b32.xlu0 %v562_v21, %s1948_s27  ;;  %590 = vst [vmem:[#allocation1] ss:$2 sm:$0xff] %v384_v0  ;;  %v402_v21 = vperm.slane %v400_v16, 0 }
  0x77   : > { %391 = vrot.lane.b32.xlu2 %v387_v1, %s1949_s23 }
  0x7d   : > { %v591_v23 = vld.sshfl [vmem:[#allocation1] sm:$0xff pattern:$0x75316420]  ;;  %v592_v24 = vld.sshfl [vmem:[#allocation1 + $0x8] sm:$0xff pattern:$0x75316420] }
  0x7e   : > { %568 = vrot.lane.b32.xlu0 %v563_v22, %s1948_s27  ;;  %595 = vrot.lane.b32.xlu1 %v591_v23, %s1950_s24  ;;  %v403_v22 = vperm.slane %v400_v16, 1  ;;  %v605_v23 = vperm.slane %v1613_v17, 0 }
  0x86   : > { %393 = vrot.lane.b32.xlu0 %v388_v2, %s1949_s23  ;;  %597 = vrot.lane.b32.xlu1 %v592_v24, %s1950_s24  ;;  %v606_v24 = vperm.slane %v1613_v17, 1 }
  0x8e   : > { %446 = vrot.lane.b32.xlu1 %v441_v10, %s1944_s17 }
  0xa0   : > { %v418_v25 = vpop.permute.xlu2 %417 }
  0xb0   : > { %v468_v31 = vpop.permute.xlu2 %467 }
  0xb8   : > { %v416_v32 = vpop.permute.xlu1 %415 }
  0xb9   : > { %v420_v33 = vsel %vm419_vm1, %v416_v32, %v418_v25  ;;  %v421_v34 = vsel %vm419_vm1, %v418_v25, %v416_v32 }
  0xba   : > { %v429_v35 = vmul.f32 %v425_v29, %v421_v34  ;;  %v430_v36 = vmul.f32 %v426_v30, %v420_v33 }
  0xbc   : > { %v433_v37 = vrot.slane %v429_v35, 4  ;;  %v434_v38 = vrot.slane %v430_v36, 4  ;;  %v1607_v36 = vld [vmem:[%s2546_s7 + $0x2] ss:$8 sm:$0x3] }
  0xbe   : > { %437 = vst [vmem:[#allocation2 + $0x30] sm:$0xf0] %v433_v37  ;;  %v454_v37 = vperm.slane %v1607_v36, 0 }
  0xbf   : > { %438 = vst [vmem:[#allocation2] sm:$0xf0] %v434_v38  ;;  %v455_v38 = vperm.slane %v1607_v36, 1 }
  0xc0   : > { %v2145_v39 = vpop.permute.xlu0 %444  ;;  %v515_v40 = vpop.permute.xlu2 %514 }
  0xc8   : > { %v470_v44 = vpop.permute.xlu0 %469 }
  0xc9   : > { %v472_v46 = vsel %vm471_vm2, %v468_v31, %v470_v44  ;;  %v473_v47 = vsel %vm471_vm2, %v470_v44, %v468_v31  ;;  %v517_v50 = vpop.permute.xlu2 %516 }
  0xca   : > { %v481_v51 = vmul.f32 %v477_v42, %v473_v47  ;;  %v482_v52 = vmul.f32 %v478_v43, %v472_v46  ;;  %v519_v53 = vsel %vm518_vm3, %v515_v40, %v517_v50  ;;  %v520_v54 = vsel %vm518_vm3, %v517_v50, %v515_v40 }
  0xcb   : > { %v528_v55 = vmul.f32 %v524_v48, %v519_v53  ;;  %v529_v56 = vmul.f32 %v525_v49, %v520_v54 }
  0xcc   : > { %v485_v57 = vrot.slane %v481_v51, 4  ;;  %v486_v58 = vrot.slane %v482_v52, 4  ;;  %v623_v52 = vld [vmem:[#allocation7] sm:$0xff] }
  0xcd   : > { %v532_v59 = vrot.slane %v528_v55, 4  ;;  %v533_v60 = vrot.slane %v529_v56, 4  ;;  %v624_v55 = vld [vmem:[#allocation7 + $0x8] sm:$0xff] }
  0xce   : > { %489 = vst [vmem:[#allocation2 + $0x18] sm:$0xf0] %v485_v57 }
  0xcf   : > { %490 = vst [vmem:[#allocation2 + $0x10] sm:$0xf0] %v486_v58 }
  0xd0   : > { %536 = vst [vmem:[#allocation2 + $0x48] sm:$0xf0] %v532_v59 }
  0xd1   : > { %537 = vst [vmem:[#allocation2 + $0x28] sm:$0xf0] %v533_v60  ;;  %v392_v20 = vpop.permute.xlu2 %391 }
  0xd7   : > { %v617_v49 = vld [vmem:[#allocation2 + $0x48] sm:$0xff] }
  0xd8   : > { %v618_v50 = vld [vmem:[#allocation2 + $0x28] sm:$0xff] }
  0xe0   : > { %v544_v0 = vpop.permute.xlu0 %543  ;;  %v546_v1 = vpop.permute.xlu1 %545 }
  0xe1   : > { %v548_v2 = vsel %vm547_vm4, %v544_v0, %v546_v1  ;;  %v549_v3 = vsel %vm547_vm4, %v546_v1, %v544_v0  ;;  %v2211_v1 = vld [vmem:[#allocation9 + $0x8] sm:$0xff] }
  0xe2   : > { %v557_v4 = vmul.f32 %v553_v62, %v548_v2  ;;  %v558_v5 = vmul.f32 %v554_v63, %v549_v3  ;;  %v2207_v63 = vld [vmem:[#allocation9] sm:$0xff]  ;;  %v1951_v2 = vmov 0  }
  0xe3   : > { %1734 = vset.pattern.permute.xlu0 %v1951_v2  ;;  %1735 = vset.pattern.permute.xlu2 %v1951_v2 }
  0xe4   : > { %559 = vst [vmem:[#allocation2 + $0x8] sm:$0xf] %v557_v4  ;;  %1736 = vset.pattern.permute.xlu1 %v1951_v2 }
  0xe5   : > { %560 = vst [vmem:[#allocation2 + $0x20] sm:$0xf] %v558_v5 }
  0xe8   : > { %v567_v6 = vpop.permute.xlu0 %566 }
  0xf0   : > { %v569_v10 = vpop.permute.xlu0 %568  ;;  %v596_v11 = vpop.permute.xlu1 %595 }
  0xf1   : > { %v571_v12 = vsel %vm570_vm5, %v567_v6, %v569_v10  ;;  %v572_v13 = vsel %vm570_vm5, %v569_v10, %v567_v6 }
  0xf2   : > { %v580_v14 = vmul.f32 %v576_v8, %v571_v12  ;;  %v581_v15 = vmul.f32 %v577_v9, %v572_v13 }
  0xf4   : > { %v584_v18 = vrot.slane %v580_v14, 4  ;;  %v585_v19 = vrot.slane %v581_v15, 4 }
  0xf6   : > { %588 = vst [vmem:[#allocation2 + $0x8] sm:$0xf0] %v584_v18 }
  0xf7   : > { %589 = vst [vmem:[#allocation2 + $0x20] sm:$0xf0] %v585_v19 }
  0xf8   : > { %v394_v25 = vpop.permute.xlu0 %393  ;;  %v598_v26 = vpop.permute.xlu1 %597 }
  0xf9   : > { %v398_v28 = vsel %vm397_vm6, %v392_v20, %v394_v25  ;;  %v399_v29 = vsel %vm397_vm6, %v394_v25, %v392_v20  ;;  %v600_v30 = vsel %vm599_vm7, %v596_v11, %v598_v26  ;;  %v601_v31 = vsel %vm599_vm7, %v598_v26, %v596_v11 }
  0xfa   : > { %v406_v32 = vmul.f32 %v402_v21, %v399_v29  ;;  %v407_v33 = vmul.f32 %v403_v22, %v398_v28  ;;  %v609_v34 = vmul.f32 %v605_v23, %v600_v30  ;;  %v610_v35 = vmul.f32 %v606_v24, %v601_v31  ;;  %v684_v31 = vld [vmem:[%s2541_s2] sm:$0xff] }
  0xfc   : > { %408 = vst [vmem:[#allocation2 + $0x30] sm:$0xf] %v406_v32 }
  0xfd   : > { %409 = vst [vmem:[#allocation2] sm:$0xf] %v407_v33  ;;  %v619_v47 = vld [vmem:[#allocation2 + $0x8] sm:$0xff] }
  0xfe   : > { %611 = vst [vmem:[#allocation2 + $0x40] sm:$0xf] %v609_v34  ;;  %v620_v48 = vld [vmem:[#allocation2 + $0x20] sm:$0xff] }
  0xff   : > { %612 = vst [vmem:[#allocation2 + $0x38] sm:$0xf] %v610_v35 }
 0x100   : > { %v447_v40 = vpop.permute.xlu1 %446 }
 0x101   : > { %v449_v41 = vsel %vm448_vm8, %v2145_v39, %v447_v40  ;;  %v450_v42 = vsel %vm448_vm8, %v447_v40, %v2145_v39 }
 0x102   : > { %v458_v43 = vmul.f32 %v454_v37, %v450_v42  ;;  %v459_v44 = vmul.f32 %v455_v38, %v449_v41  ;;  %v685_v38 = vld [vmem:[%s2541_s2 + $0x8] sm:$0xff]  ;;  %v686_v42 = vld [vmem:[%s2542_s3] sm:$0xff] }
 0x103   : > { %v613_v53 = vld [vmem:[#allocation2 + $0x30] sm:$0xff] }
 0x104   : > { %460 = vst [vmem:[#allocation2 + $0x18] sm:$0xf] %v458_v43  ;;  %v614_v54 = vld [vmem:[#allocation2] sm:$0xff] }
 0x105   : > { %461 = vst [vmem:[#allocation2 + $0x10] sm:$0xf] %v459_v44  ;;  %v621_v45 = vld [vmem:[#allocation2 + $0x40] sm:$0xf] }
 0x106   : > { %1614 = vmatpush.msk.msra.mxu0 %vm497_vm0, %v621_v45  ;;  %v622_v46 = vld [vmem:[#allocation2 + $0x38] sm:$0xf]  ;;  %v687_v44 = vld [vmem:[%s2542_s3 + $0x8] sm:$0xff] }
 0x107   : > { %1617 = vmatpush.msk.msra.mxu1 %vm497_vm0, %v622_v46 }
 0x108   : > { %650 = vmatpush.msra.mxu0 %v619_v47 }
 0x109   : > { %673 = vmatpush.msra.mxu1 %v620_v48 }
 0x10a   : > { %651 = vmatpush.msra.mxu0 %v617_v49 }
 0x10b   : > { %674 = vmatpush.msra.mxu1 %v618_v50  ;;  %v615_v51 = vld [vmem:[#allocation2 + $0x18] sm:$0xff] }
 0x10c   : > { %652 = vmatpush.msra.mxu0 %v615_v51  ;;  %v616_v39 = vld [vmem:[#allocation2 + $0x10] sm:$0xff] }
 0x10d   : > { %675 = vmatpush.msra.mxu1 %v616_v39 }
 0x10e   : > { %653 = vmatpush.msra.mxu0 %v613_v53 }
 0x10f   : > { %676 = vmatpush.msra.mxu1 %v614_v54  ;;  %1615 = vmatmul.msk.f32.vlgmr.msra.gmra.mxu0 %vm625_vm9, %v623_v52 }
 0x110   : > { %1618 = vmatmul.msk.f32.vlgmr.msra.gmra.mxu1 %vm625_vm9, %v623_v52 }
 0x117   : > { %1616 = vmatmul.msk.f32.gmra.mxu0 %vm625_vm9, %v624_v55 }
 0x118   : > { %1619 = vmatmul.msk.f32.gmra.mxu1 %vm625_vm9, %v624_v55 }
 0x18c   : > { %v655_v56 = vpop.f32.mrf.mxu0 }
 0x18d   : > { %v678_v57 = vpop.f32.mrf.mxu1 }
 0x18e   : > { %v690_v58 = vadd.f32 %v678_v57, %v655_v56 }
 0x190   : > { %691 = vadd.xlane.f32.xlu2 %v690_v58 }
 0x194   : > { %v658_v59 = vpop.f32.mrf.mxu0 }
 0x195   : > { %v681_v60 = vpop.f32.mrf.mxu1 }
 0x196   : > { %v693_v61 = vadd.f32 %v681_v60, %v658_v59 }
 0x198   : > { %694 = vadd.xlane.f32.xlu1 %v693_v61 }
 0x203   : > { %v692_v0 = vpop.xlane.xlu2 %691 }
 0x20b   : > { %v695_v62 = vpop.xlane.xlu1 %694 }
 0x20c   : > { %717 = vmatpush.msra.mxu2 %v695_v62 }
 0x20e   : > { %718 = vmatpush.msra.mxu2 %v692_v0 }
 0x20f   : > { %1620 = vmatmul.msk.f32.vlgmr.msra.gmra.mxu2 %vm2550_vm10, %v2207_v63 }
 0x217   : > { %1621 = vmatmul.msk.f32.gmra.mxu2 %vm2550_vm10, %v2211_v1 }
 0x292   : > { %v720_v3 = vpop.f32.mrf.mxu2 }
 0x29a   : > { %v723_v4 = vpop.f32.mrf.mxu2 }
 0x29b   : > { %733 = vperm.xlu0 %1734, %v723_v4  }
 0x2a3   : > { %728 = vperm.xlu0 %1734, %v720_v3  }
 0x30d   : > { %v734_v5 = vpop.permute.xlu0 %733 }
 0x30e   : > { %v2215_v6 = vsub.f32 %v658_v59, %v734_v5  ;;  %v2217_v7 = vsub.f32 %v681_v60, %v734_v5 }
 0x310   : > { %v742_v8 = vmul.f32 %v2215_v6, %v2215_v6  ;;  %v743_v9 = vmul.f32 %v2217_v7, %v2217_v7 }
 0x312   : > { %v747_v10 = vadd.f32 %v743_v9, %v742_v8 }
 0x314   : > { %748 = vadd.xlane.f32.xlu0 %v747_v10 }
 0x315   : > { %v729_v11 = vpop.permute.xlu0 %728 }
 0x316   : > { %v736_v12 = vsub.f32 %v655_v56, %v729_v11  ;;  %v737_v13 = vsub.f32 %v678_v57, %v729_v11 }
 0x318   : > { %v740_v14 = vmul.f32 %v736_v12, %v736_v12  ;;  %v741_v15 = vmul.f32 %v737_v13, %v737_v13 }
 0x31a   : > { %v744_v16 = vadd.f32 %v741_v15, %v740_v14 }
 0x31c   : > { %745 = vadd.xlane.f32.xlu2 %v744_v16 }
 0x387   : > { %v749_v17 = vpop.xlane.xlu0 %748 }
 0x388   : > { %764 = vmatpush.msra.mxu3 %v749_v17 }
 0x38f   : > { %v746_v18 = vpop.xlane.xlu2 %745 }
 0x390   : > { %765 = vmatpush.msra.mxu3 %v746_v18 }
 0x391   : > { %1622 = vmatmul.msk.f32.vlgmr.msra.gmra.mxu3 %vm2550_vm10, %v2207_v63 }
 0x399   : > { %1623 = vmatmul.msk.f32.gmra.mxu3 %vm2550_vm10, %v2211_v1 }
 0x414   : > { %v767_v19 = vpop.f32.mrf.mxu3 }
 0x415   : > { %v768_v20 = vadd.f32 1e-05, %v767_v19 }
 0x417   : > { %1737 = vrsqrt.f32 %v768_v20  ;;  %vm779_vm12 = vweird.f32 %v768_v20 }
 0x41c   : > { %v770_v21 = vpop.f32.mrf.mxu3 }
 0x41d   : > { %v1738_v22 = vpop.eup %1737  ;;  %v771_v23 = vadd.f32 1e-05, %v770_v21 }
 0x41e   : > { %v774_v24 = vmul.f32 %v1738_v22, %v768_v20  ;;  %vm780_vm11 = vweird.f32 %v1738_v22 }
 0x41f   : > { %1739 = vrsqrt.f32 %v771_v23  ;;  %vm781_vm13 = vmor %vm779_vm12, %vm780_vm11  ;;  %vm789_vm15 = vweird.f32 %v771_v23 }
 0x420   : > { %v775_v25 = vmul.f32 %v1738_v22, %v774_v24 }
 0x422   : > { %v776_v26 = vmul.f32 0.5, %v775_v25 }
 0x424   : > { %v777_v28 = vsub.f32 1.5, %v776_v26 }
 0x425   : > { %v1740_v29 = vpop.eup %1739 }
 0x426   : > { %v784_v30 = vmul.f32 %v1740_v29, %v771_v23  ;;  %v778_v32 = vmul.f32 %v1738_v22, %v777_v28  ;;  %vm790_vm14 = vweird.f32 %v1740_v29 }
 0x427   : > { %vm791_vm0 = vmor %vm789_vm15, %vm790_vm14 }
 0x428   : > { %v785_v33 = vmul.f32 %v1740_v29, %v784_v30  ;;  %v782_v34 = vsel %vm781_vm13, %v1738_v22, %v778_v32 }
 0x429   : > { %v793_v35 = vmul.f32 %v782_v34, %v684_v31 }
 0x42a   : > { %v786_v36 = vmul.f32 0.5, %v785_v33 }
 0x42b   : > { %797 = vperm.xlu2 %1735, %v793_v35  }
 0x42c   : > { %v787_v37 = vsub.f32 1.5, %v786_v36 }
 0x42e   : > { %v788_v40 = vmul.f32 %v1740_v29, %v787_v37 }
 0x430   : > { %v792_v41 = vsel %vm791_vm0, %v1740_v29, %v788_v40 }
 0x431   : > { %v794_v43 = vmul.f32 %v792_v41, %v685_v38 }
 0x433   : > { %802 = vperm.xlu1 %1736, %v794_v43   ;;  %811 = vperm.xlu2 %1735, %v686_v42  }
 0x43b   : > { %816 = vperm.xlu1 %1736, %v687_v44  }
 0x485   : > { %v798_v45 = vpop.permute.xlu2 %797 }
 0x486   : > { %v805_v46 = vmul.f32 %v798_v45, %v736_v12  ;;  %v806_v47 = vmul.f32 %v798_v45, %v737_v13 }
 0x48d   : > { %v812_v48 = vpop.permute.xlu2 %811 }
 0x48e   : > { %v819_v49 = vadd.f32 %v812_v48, %v805_v46  ;;  %v820_v50 = vadd.f32 %v812_v48, %v806_v47 }
 0x490   : > { %v1624_v51 = vmul.f32 -1.442695, %v819_v49  ;;  %v1625_v39 = vmul.f32 -1.442695, %v820_v50 }
 0x492   : > { %1741 = vpow2.f32 %v1624_v51 }
 0x493   : > { %1743 = vpow2.f32 %v1625_v39 }
 0x498   : > { %v1742_v52 = vpop.eup %1741 }
 0x499   : > { %v1744_v53 = vpop.eup %1743  ;;  %v835_v54 = vadd.f32 1.0, %v1742_v52 }
 0x49a   : > { %v836_v55 = vadd.f32 1.0, %v1744_v53 }
 0x49b   : > { %1745 = vrcp.f32 %v835_v54  ;;  %v850_v61 = vand.u32 2147483648, %v835_v54  ;;  %v848_v3 = vand.u32 2147483647, %v835_v54  ;;  %vm844_vm12 = vweird.f32 %v835_v54 }
 0x49c   : > { %1747 = vrcp.f32 %v836_v55  ;;  %v865_v4 = vand.u32 2147483648, %v836_v55  ;;  %v863_v8 = vand.u32 2147483647, %v836_v55  ;;  %vm859_vm14 = vweird.f32 %v836_v55 }
 0x49d   : > { %v851_v10 = vor.u32 1.1754944e-38, %v850_v61  ;;  %vm849_vm15 = vcmp.eq.f32.partialorder %v848_v3, 8.507059e+37 }
 0x49e   : > { %v866_v13 = vor.u32 1.1754944e-38, %v865_v4  ;;  %vm864_vm10 = vcmp.eq.f32.partialorder %v863_v8, 8.507059e+37 }
 0x4a1   : > { %v1746_v56 = vpop.eup %1745 }
 0x4a2   : > { %v1748_v57 = vpop.eup %1747  ;;  %v840_v58 = vmul.f32 %v1746_v56, %v835_v54  ;;  %vm845_vm9 = vweird.f32 %v1746_v56 }
 0x4a3   : > { %v855_v59 = vmul.f32 %v1748_v57, %v836_v55  ;;  %vm860_vm11 = vweird.f32 %v1748_v57  ;;  %vm846_vm13 = vmor %vm844_vm12, %vm845_vm9 }
 0x4a4   : > { %v841_v60 = vsub.f32 1.0, %v840_v58  ;;  %vm861_vm0 = vmor %vm859_vm14, %vm860_vm11 }
 0x4a5   : > { %v856_v62 = vsub.f32 1.0, %v855_v59  ;;  %v803_v0 = vpop.permute.xlu1 %802 }
 0x4a6   : > { %v842_v2 = vmul.f32 %v1746_v56, %v841_v60  ;;  %v807_v18 = vmul.f32 %v803_v0, %v2215_v6  ;;  %v808_v19 = vmul.f32 %v803_v0, %v2217_v7 }
 0x4a7   : > { %v857_v5 = vmul.f32 %v1748_v57, %v856_v62 }
 0x4a8   : > { %v843_v9 = vadd.f32 %v1746_v56, %v842_v2  ;;  %v1634_v2 = vld [vmem:[%s2546_s7 + $0x7] ss:$8 sm:$0x3] }
 0x4a9   : > { %v858_v11 = vadd.f32 %v1748_v57, %v857_v5  ;;  %v1087_v5 = vperm.slane %v1634_v2, 0  ;;  %v1088_v8 = vperm.slane %v1634_v2, 1 }
 0x4aa   : > { %v847_v12 = vsel %vm846_vm13, %v1746_v56, %v843_v9 }
 0x4ab   : > { %v852_v14 = vsel %vm849_vm15, %v851_v10, %v847_v12  ;;  %v862_v15 = vsel %vm861_vm0, %v1748_v57, %v858_v11 }
 0x4ac   : > { %v867_v16 = vsel %vm864_vm10, %v866_v13, %v862_v15  ;;  %v2239_v17 = vmul.f32 %v852_v14, %v819_v49 }
 0x4ad   : > { %v2243_v20 = vmul.f32 %v867_v16, %v820_v50  ;;  %v817_v21 = vpop.permute.xlu1 %816 }
 0x4ae   : > { %v821_v22 = vadd.f32 %v817_v21, %v807_v18  ;;  %v822_v23 = vadd.f32 %v817_v21, %v808_v19  ;;  %1047 = vrot.lane.b32.xlu0 %v2239_v17, %s1947_s13  ;;  %1073 = vrot.lane.b32.xlu2 %v2239_v17, %s1948_s27  ;;  %v1633_v19 = vld [vmem:[%s2546_s7 + $0x6] ss:$8 sm:$0x3] }
 0x4af   : > { %1077 = vrot.lane.b32.xlu1 %v2243_v20, %s1948_s27 }
 0x4b0   : > { %v1626_v24 = vmul.f32 -1.442695, %v821_v22  ;;  %v1627_v25 = vmul.f32 -1.442695, %v822_v23 }
 0x4b2   : > { %1749 = vpow2.f32 %v1626_v24  ;;  %v1062_v24 = vperm.slane %v1633_v19, 1 }
 0x4b3   : > { %1751 = vpow2.f32 %v1627_v25 }
 0x4b6   : > { %985 = vrot.lane.b32.xlu0 %v2243_v20, %s1945_s14  ;;  %1051 = vrot.lane.b32.xlu2 %v2243_v20, %s1947_s13 }
 0x4b7   : > { %1025 = vrot.lane.b32.xlu1 %v2243_v20, %s1946_s15 }
 0x4b8   : > { %v1750_v6 = vpop.eup %1749 }
 0x4b9   : > { %v1752_v7 = vpop.eup %1751  ;;  %v837_v26 = vadd.f32 1.0, %v1750_v6 }
 0x4ba   : > { %v838_v28 = vadd.f32 1.0, %v1752_v7 }
 0x4bb   : > { %1753 = vrcp.f32 %v837_v26  ;;  %v880_v34 = vand.u32 2147483648, %v837_v26  ;;  %v878_v37 = vand.u32 2147483647, %v837_v26  ;;  %vm874_vm11 = vweird.f32 %v837_v26 }
 0x4bc   : > { %1755 = vrcp.f32 %v838_v28  ;;  %v895_v38 = vand.u32 2147483648, %v838_v28  ;;  %v893_v41 = vand.u32 2147483647, %v838_v28  ;;  %vm889_vm13 = vweird.f32 %v838_v28 }
 0x4bd   : > { %v881_v43 = vor.u32 1.1754944e-38, %v880_v34  ;;  %vm879_vm14 = vcmp.eq.f32.partialorder %v878_v37, 8.507059e+37 }
 0x4be   : > { %955 = vrot.lane.b32.xlu0 %v2239_v17, %s1944_s17  ;;  %1021 = vrot.lane.b32.xlu2 %v2239_v17, %s1946_s15  ;;  %v896_v46 = vor.u32 1.1754944e-38, %v895_v38  ;;  %vm894_vm0 = vcmp.eq.f32.partialorder %v893_v41, 8.507059e+37 }
 0x4bf   : > { %981 = vrot.lane.b32.xlu1 %v2239_v17, %s1945_s14 }
 0x4c1   : > { %v1754_v29 = vpop.eup %1753 }
 0x4c2   : > { %v1756_v30 = vpop.eup %1755  ;;  %v870_v31 = vmul.f32 %v1754_v29, %v837_v26  ;;  %vm875_vm10 = vweird.f32 %v1754_v29 }
 0x4c3   : > { %v885_v32 = vmul.f32 %v1756_v30, %v838_v28  ;;  %vm890_vm9 = vweird.f32 %v1756_v30  ;;  %vm876_vm12 = vmor %vm874_vm11, %vm875_vm10 }
 0x4c4   : > { %v871_v33 = vsub.f32 1.0, %v870_v31  ;;  %vm891_vm15 = vmor %vm889_vm13, %vm890_vm9 }
 0x4c5   : > { %v886_v35 = vsub.f32 1.0, %v885_v32  ;;  %v1632_v32 = vld [vmem:[%s2546_s7 + $0x5] ss:$8 sm:$0x3] }
 0x4c6   : > { %v872_v36 = vmul.f32 %v1754_v29, %v871_v33  ;;  %959 = vrot.lane.b32.xlu2 %v2243_v20, %s1944_s17  ;;  %v1036_v37 = vperm.slane %v1632_v32, 1 }
 0x4c7   : > { %v887_v40 = vmul.f32 %v1756_v30, %v886_v35  ;;  %933 = vrot.lane.b32.xlu1 %v2243_v20, %s1943_s11 }
 0x4c8   : > { %v873_v42 = vadd.f32 %v1754_v29, %v872_v36  ;;  %v1035_v36 = vperm.slane %v1632_v32, 0 }
 0x4c9   : > { %v888_v44 = vadd.f32 %v1756_v30, %v887_v40 }
 0x4ca   : > { %v877_v45 = vsel %vm876_vm12, %v1754_v29, %v873_v42 }
 0x4cb   : > { %v882_v47 = vsel %vm879_vm14, %v881_v43, %v877_v45  ;;  %v892_v48 = vsel %vm891_vm15, %v1756_v30, %v888_v44  ;;  %v1631_v43 = vld [vmem:[%s2546_s7 + $0x4] ss:$8 sm:$0x3] }
 0x4cc   : > { %v897_v49 = vsel %vm894_vm0, %v896_v46, %v892_v48  ;;  %v2267_v50 = vmul.f32 %v882_v47, %v821_v22  ;;  %v1009_v48 = vperm.slane %v1631_v43, 0 }
 0x4cd   : > { %v2269_v51 = vmul.f32 %v897_v49, %v822_v23  ;;  %v1061_v23 = vperm.slane %v1633_v19, 0  ;;  %v1010_v49 = vperm.slane %v1631_v43, 1 }
 0x4ce   : > { %1075 = vrot.lane.b32.xlu0 %v2267_v50, %s1948_s27  ;;  %929 = vrot.lane.b32.xlu2 %v2239_v17, %s1943_s11 }
 0x4cf   : > { %1079 = vrot.lane.b32.xlu1 %v2269_v51, %s1948_s27  ;;  %s1887_s27 = scalar_lea.hbm %s2548_s9, 64 }
 0x4d6   : > { %1027 = vrot.lane.b32.xlu0 %v2269_v51, %s1946_s15  ;;  %903 = vrot.lane.b32.xlu2 %v2239_v17, %s1949_s23 }
 0x4d7   : > { %1053 = vrot.lane.b32.xlu1 %v2269_v51, %s1947_s13 }
 0x4de   : > { %983 = vrot.lane.b32.xlu0 %v2267_v50, %s1945_s14  ;;  %1049 = vrot.lane.b32.xlu2 %v2267_v50, %s1947_s13 }
 0x4df   : > { %1023 = vrot.lane.b32.xlu1 %v2267_v50, %s1946_s15 }
 0x4e6   : > { %935 = vrot.lane.b32.xlu0 %v2269_v51, %s1943_s11  ;;  %987 = vrot.lane.b32.xlu2 %v2269_v51, %s1945_s14 }
 0x4e7   : > { %961 = vrot.lane.b32.xlu1 %v2269_v51, %s1944_s17 }
 0x4ee   : > { %905 = vrot.lane.b32.xlu0 %v2267_v50, %s1949_s23  ;;  %957 = vrot.lane.b32.xlu2 %v2267_v50, %s1944_s17  ;;  %s1881_s17 = sshra.s32 %s1501_s18, 4  ;;  %s1882_s17 = int_to_ptr.hbm [resolvable:$true] %s1881_s17 }
 0x4ef   : > { %931 = vrot.lane.b32.xlu1 %v2267_v50, %s1943_s11  ;;  %s1883_s14 = scalar_lea.hbm %s1882_s17, 32  ;;  %p1888_p12 = scmp.lt.s32.totalorder %s1882_s17, %s2548_s9 }
 0x4f0   : > { %p1884_p1 = scmp.ne.s32.totalorder %s1882_s17, %s1883_s14  ;;  %p1889_p7 = scmp.lt.s32.totalorder %s1887_s27, %s1883_s14 }
 0x4f2   : > { %p1885_p3 = pnand %p1884_p1, %p2072_p4  ;;  %p1890_p8 = por %p1889_p7, %p1888_p12 }
 0x4f4   : > { %p1886_p5 = pneg %p1885_p3 }
 0x4f6   : > { %1105 = vrot.lane.b32.xlu0 %v2269_v51, %s1950_s24  ;;  %909 = vrot.lane.b32.xlu2 %v2269_v51, %s1949_s23  ;;  %p1891_p9 = pnand %p1890_p8, %p1886_p5 }
 0x4f7   : > { %1101 = vrot.lane.b32.xlu1 %v2267_v50, %s1950_s24 }
 0x4fe   : > { %1099 = vrot.lane.b32.xlu0 %v2239_v17, %s1950_s24  ;;  %1103 = vrot.lane.b32.xlu2 %v2243_v20, %s1950_s24  ;;  %s1605_s24 = sshll.u32 %s2103_s19, 5 }
 0x4ff   : > { %907 = vrot.lane.b32.xlu1 %v2243_v20, %s1949_s23  ;;  %s2493_s29 = scalar_lea.vmem [#allocation10], %s1605_s24 }
 0x500   : > { %s1498_s16 = sshll.u32 %s2493_s29, 4  ;;  %s1499_s16 = int_to_ptr.vmem [resolvable:$true] %s1498_s16 }
 0x508   : > { %v1074_v39 = vpop.permute.xlu2 %1073 }
 0x510   : > { %v1052_v52 = vpop.permute.xlu2 %1051 }
 0x518   : > { %v1022_v53 = vpop.permute.xlu2 %1021 }
 0x520   : > { %v1048_v55 = vpop.permute.xlu0 %1047  ;;  %v2313_v56 = vpop.permute.xlu2 %959 }
 0x521   : > { %v1078_v54 = vpop.permute.xlu1 %1077  ;;  %v1055_v25 = vsel %vm547_vm4, %v1048_v55, %v1052_v52  ;;  %v1057_v6 = vsel %vm547_vm4, %v1052_v52, %v1048_v55  ;;  %v1015_v52 = vmul.f32 %v1009_v48, %v2267_v50 }
 0x522   : > { %v1081_v9 = vsel %vm570_vm5, %v1074_v39, %v1078_v54  ;;  %v1083_v10 = vsel %vm570_vm5, %v1078_v54, %v1074_v39  ;;  %v1065_v30 = vmul.f32 %v1061_v23, %v1055_v25  ;;  %v1066_v31 = vmul.f32 %v1062_v24, %v1057_v6  ;;  %v1630_v39 = vld [vmem:[%s2546_s7 + $0x3] ss:$8 sm:$0x3] }
 0x523   : > { %v1091_v16 = vmul.f32 %v1087_v5, %v1081_v9  ;;  %v1092_v18 = vmul.f32 %v1088_v8, %v1083_v10  ;;  %v996_v9 = vperm.slane %v1630_v39, 1  ;;  %v1629_v10 = vld [vmem:[%s2546_s7 + $0x2] ss:$8 sm:$0x3] }
 0x528   : > { %v2315_v58 = vpop.permute.xlu0 %985  ;;  %v2317_v59 = vpop.permute.xlu2 %929 }
 0x529   : > { %v1026_v57 = vpop.permute.xlu1 %1025 }
 0x52a   : > { %v1029_v38 = vsel %vm518_vm3, %v1022_v53, %v1026_v57  ;;  %v1031_v40 = vsel %vm518_vm3, %v1026_v57, %v1022_v53  ;;  %v1016_v53 = vmul.f32 %v1010_v49, %v2269_v51 }
 0x52b   : > { %v1039_v46 = vmul.f32 %v1035_v36, %v1029_v38  ;;  %v1040_v47 = vmul.f32 %v1036_v37, %v1031_v40 }
 0x530   : > { %v2321_v61 = vpop.permute.xlu0 %955  ;;  %v2325_v0 = vpop.permute.xlu2 %903 }
 0x531   : > { %v2319_v60 = vpop.permute.xlu1 %981 }
 0x532   : > { %v989_v50 = vsel %vm471_vm2, %v2319_v60, %v2315_v58  ;;  %v991_v51 = vsel %vm471_vm2, %v2315_v58, %v2319_v60  ;;  %v970_v58 = vperm.slane %v1629_v10, 1  ;;  %v963_v60 = vsel %vm448_vm8, %v2321_v61, %v2313_v56 }
 0x534   : > { %v974_v6 = vmul.f32 %v970_v58, %v963_v60 }
 0x538   : > { %v1050_v15 = vpop.permute.xlu2 %1049 }
 0x539   : > { %v2323_v62 = vpop.permute.xlu1 %933 }
 0x540   : > { %v1076_v3 = vpop.permute.xlu0 %1075  ;;  %v988_v33 = vpop.permute.xlu2 %987 }
 0x541   : > { %v1080_v4 = vpop.permute.xlu1 %1079 }
 0x542   : > { %v1082_v11 = vsel %vm570_vm5, %v1076_v3, %v1080_v4  ;;  %v1084_v12 = vsel %vm570_vm5, %v1080_v4, %v1076_v3  ;;  %v1013_v4 = vmul.f32 %v1009_v48, %v2239_v17 }
 0x543   : > { %v1093_v13 = vmul.f32 %v1087_v5, %v1082_v11  ;;  %v1094_v14 = vmul.f32 %v1088_v8, %v1084_v12  ;;  %v1014_v5 = vmul.f32 %v1010_v49, %v2243_v20  ;;  %v995_v8 = vperm.slane %v1630_v39, 0 }
 0x545   : > { %1171 = vmatpush.msrb.mxu2 %v1093_v13  ;;  %1217 = vmatpush.msrb.mxu0 %v1094_v14  ;;  %v999_v13 = vmul.f32 %v995_v8, %v991_v51  ;;  %v1000_v14 = vmul.f32 %v996_v9, %v989_v50 }
 0x547   : > { %1172 = vmatpush.msrb.mxu2 %v1091_v16  ;;  %1218 = vmatpush.msrb.mxu0 %v1092_v18  ;;  %v965_v16 = vsel %vm448_vm8, %v2313_v56, %v2321_v61  ;;  %v1628_v18 = vld [vmem:[%s2546_s7 + $0x1] ss:$8 sm:$0x3]  ;;  %v937_v61 = vsel %vm419_vm1, %v2317_v59, %v2323_v62 }
 0x548   : > { %v1028_v21 = vpop.permute.xlu0 %1027  ;;  %v958_v2 = vpop.permute.xlu2 %957  ;;  %v944_v56 = vperm.slane %v1628_v18, 1 }
 0x549   : > { %v1054_v22 = vpop.permute.xlu1 %1053 }
 0x54a   : > { %v1056_v7 = vsel %vm547_vm4, %v1050_v15, %v1054_v22  ;;  %v1058_v26 = vsel %vm547_vm4, %v1054_v22, %v1050_v15  ;;  %v969_v15 = vperm.slane %v1629_v10, 0 }
 0x54b   : > { %v1067_v28 = vmul.f32 %v1061_v23, %v1056_v7  ;;  %v1068_v29 = vmul.f32 %v1062_v24, %v1058_v26  ;;  %v915_v23 = vld [vmem:[%s2546_s7] ss:$8 sm:$0x3]  ;;  %v943_v7 = vperm.slane %v1628_v18, 0  ;;  %v939_v26 = vsel %vm419_vm1, %v2323_v62, %v2317_v59 }
 0x54c   : > { %v973_v25 = vmul.f32 %v969_v15, %v965_v16  ;;  %v1635_v59 = vld [vmem:[%s2546_s7 + $0x10] ss:$8 sm:$0x3] }
 0x54d   : > { %1173 = vmatpush.msrb.mxu2 %v1067_v28  ;;  %1219 = vmatpush.msrb.mxu0 %v1068_v29  ;;  %v947_v62 = vmul.f32 %v943_v7, %v939_v26 }
 0x54f   : > { %1174 = vmatpush.msrb.mxu2 %v1065_v30  ;;  %1220 = vmatpush.msrb.mxu0 %v1066_v31 }
 0x550   : > { %v984_v34 = vpop.permute.xlu0 %983  ;;  %v910_v30 = vpop.permute.xlu2 %909 }
 0x551   : > { %v1024_v35 = vpop.permute.xlu1 %1023  ;;  %v990_v54 = vsel %vm471_vm2, %v984_v34, %v988_v33  ;;  %v992_v55 = vsel %vm471_vm2, %v988_v33, %v984_v34  ;;  %v917_v33 = vperm.slane %v915_v23, 0  ;;  %v918_v34 = vperm.slane %v915_v23, 1 }
 0x552   : > { %v1030_v41 = vsel %vm518_vm3, %v1024_v35, %v1028_v21  ;;  %v1032_v42 = vsel %vm518_vm3, %v1028_v21, %v1024_v35  ;;  %v1001_v17 = vmul.f32 %v995_v8, %v992_v55  ;;  %v1002_v20 = vmul.f32 %v996_v9, %v990_v54  ;;  %v1161_v8 = vld [vmem:[%s2543_s4] sm:$0xff]  ;;  %v1162_v9 = vld [vmem:[%s2543_s4 + $0x8] sm:$0xff] }
 0x553   : > { %v1041_v44 = vmul.f32 %v1035_v36, %v1030_v41  ;;  %v1042_v45 = vmul.f32 %v1036_v37, %v1032_v42  ;;  %v948_v37 = vmul.f32 %v944_v56, %v937_v61  ;;  %v1113_v41 = vperm.slane %v1635_v59, 0 }
 0x554   : > { %v1114_v42 = vperm.slane %v1635_v59, 1 }
 0x555   : > { %1175 = vmatpush.msrb.mxu2 %v1041_v44  ;;  %1221 = vmatpush.msrb.mxu0 %v1042_v45 }
 0x557   : > { %1176 = vmatpush.msrb.mxu2 %v1039_v46  ;;  %1222 = vmatpush.msrb.mxu0 %v1040_v47 }
 0x558   : > { %v936_v57 = vpop.permute.xlu0 %935  ;;  %v1104_v49 = vpop.permute.xlu2 %1103 }
 0x559   : > { %v962_v3 = vpop.permute.xlu1 %961  ;;  %1177 = vmatpush.msrb.mxu2 %v1015_v52  ;;  %1223 = vmatpush.msrb.mxu0 %v1016_v53 }
 0x55a   : > { %v964_v11 = vsel %vm448_vm8, %v958_v2, %v962_v3  ;;  %v966_v12 = vsel %vm448_vm8, %v962_v3, %v958_v2 }
 0x55b   : > { %1178 = vmatpush.msrb.mxu2 %v1013_v4  ;;  %1224 = vmatpush.msrb.mxu0 %v1014_v5  ;;  %v975_v19 = vmul.f32 %v969_v15, %v966_v12  ;;  %v976_v21 = vmul.f32 %v970_v58, %v964_v11 }
 0x55d   : > { %1179 = vmatpush.msrb.mxu2 %v1001_v17  ;;  %1225 = vmatpush.msrb.mxu0 %v1002_v20 }
 0x55f   : > { %1180 = vmatpush.msrb.mxu2 %v999_v13  ;;  %1226 = vmatpush.msrb.mxu0 %v1000_v14 }
 0x560   : > { %v906_v22 = vpop.permute.xlu0 %905 }
 0x561   : > { %v932_v24 = vpop.permute.xlu1 %931  ;;  %1181 = vmatpush.msrb.mxu2 %v975_v19  ;;  %1227 = vmatpush.msrb.mxu0 %v976_v21  ;;  %v912_v35 = vsel %vm397_vm6, %v906_v22, %v910_v30  ;;  %v914_v36 = vsel %vm397_vm6, %v910_v30, %v906_v22 }
 0x562   : > { %v938_v28 = vsel %vm419_vm1, %v932_v24, %v936_v57  ;;  %v940_v29 = vsel %vm419_vm1, %v936_v57, %v932_v24  ;;  %v923_v38 = vmul.f32 %v917_v33, %v914_v36  ;;  %v924_v40 = vmul.f32 %v918_v34, %v912_v35 }
 0x563   : > { %1182 = vmatpush.msrb.mxu2 %v973_v25  ;;  %1228 = vmatpush.msrb.mxu0 %v974_v6  ;;  %v949_v31 = vmul.f32 %v943_v7, %v940_v29  ;;  %v950_v32 = vmul.f32 %v944_v56, %v938_v28  ;;  %vm2563_vm1 = vcmask 130048  }
 0x564   : > { %vm2564_vm2 = vmmov %vm2563_vm1 }
 0x565   : > { %1183 = vmatpush.msrb.mxu2 %v949_v31  ;;  %1229 = vmatpush.msrb.mxu0 %v950_v32  ;;  %vm2565_vm3 = vmmov %vm2563_vm1 }
 0x566   : > { %vm2566_vm4 = vmmov %vm2563_vm1 }
 0x567   : > { %1184 = vmatpush.msrb.mxu2 %v947_v62  ;;  %1230 = vmatpush.msrb.mxu0 %v948_v37  ;;  %vm2567_vm5 = vmmov %vm2563_vm1 }
 0x568   : > { %v1106_v43 = vpop.permute.xlu0 %1105  ;;  %vm2570_vm8 = vmmov %vm2563_vm1 }
 0x569   : > { %v1102_v44 = vpop.permute.xlu1 %1101  ;;  %1185 = vmatpush.msrb.mxu2 %v923_v38  ;;  %1231 = vmatpush.msrb.mxu0 %v924_v40 }
 0x56a   : > { %v1108_v45 = vsel %vm599_vm7, %v1102_v44, %v1106_v43  ;;  %v1110_v46 = vsel %vm599_vm7, %v1106_v43, %v1102_v44 }
 0x56b   : > { %v1119_v47 = vmul.f32 %v1113_v41, %v1108_v45  ;;  %v1120_v48 = vmul.f32 %v1114_v42, %v1110_v46 }
 0x56d   : > { %1208 = vmatpush.msrb.mxu3 %v1119_v47  ;;  %1254 = vmatpush.msrb.mxu1 %v1120_v48 }
 0x570   : > { %v1100_v39 = vpop.permute.xlu0 %1099 }
 0x571   : > { %v908_v52 = vpop.permute.xlu1 %907  ;;  %v1107_v53 = vsel %vm599_vm7, %v1100_v39, %v1104_v49  ;;  %v1109_v54 = vsel %vm599_vm7, %v1104_v49, %v1100_v39  ;;  %vm2569_vm7 = vmmov %vm2563_vm1 }
 0x572   : > { %v911_v55 = vsel %vm397_vm6, %v2325_v0, %v908_v52  ;;  %v913_v57 = vsel %vm397_vm6, %v908_v52, %v2325_v0  ;;  %v1117_v2 = vmul.f32 %v1113_v41, %v1107_v53  ;;  %v1118_v3 = vmul.f32 %v1114_v42, %v1109_v54  ;;  %v1164_v0 = vld [vmem:[%s2543_s4 + $0x18] sm:$0xff]  ;;  %vm2568_vm6 = vmmov %vm2563_vm1  ;;  %v1264_v53 = vld [vmem:[%s2544_s5 + $0x8] sm:$0xff] }
 0x573   : > { %v921_v4 = vmul.f32 %v917_v33, %v913_v57  ;;  %v922_v5 = vmul.f32 %v918_v34, %v911_v55  ;;  %v1265_v33 = vld [vmem:[%s2545_s6] sm:$0xff]  ;;  %v1266_v55 = vld [vmem:[%s2545_s6 + $0x8] sm:$0xff] }
 0x574   : > { %1209 = vmatpush.msrb.mxu3 %v1117_v2  ;;  %1255 = vmatpush.msrb.mxu1 %v1118_v3 }
 0x575   : > { %1186 = vmatpush.msrb.mxu2 %v921_v4  ;;  %1232 = vmatpush.msrb.mxu0 %v922_v5 }
 0x576   : > { %1187 = vmatmul.f32.vlgmr.msrb.gmra.mxu2 %v1161_v8  ;;  %1636 = vmatmul.msk.f32.vlgmr.msrb.gmra.mxu3 %vm2563_vm1, %v1162_v9 }
 0x577   : > { %1233 = vmatmul.f32.vlgmr.msrb.gmra.mxu0 %v1161_v8  ;;  %1638 = vmatmul.msk.f32.vlgmr.msrb.gmra.mxu1 %vm2564_vm2, %v1162_v9 }
 0x57e   : > { %1190 = vmatmul.f32.gmra.mxu2 %v1163_v27  ;;  %1637 = vmatmul.msk.f32.gmra.mxu3 %vm2565_vm3, %v1164_v0 }
 0x57f   : > { %1236 = vmatmul.f32.gmra.mxu0 %v1163_v27  ;;  %1639 = vmatmul.msk.f32.gmra.mxu1 %vm2566_vm4, %v1164_v0 }
 0x5f4   : > { %v1234_v50 = vpop.f32.mrf.mxu0  ;;  %v1257_v51 = vpop.f32.mrf.mxu1 }
 0x5f5   : > { %v1258_v10 = vadd.f32 %v1257_v51, %v1234_v50 }
 0x5f9   : > { %v1188_v17 = vpop.f32.mrf.mxu2  ;;  %v1211_v20 = vpop.f32.mrf.mxu3 }
 0x5fa   : > { %v1212_v11 = vadd.f32 %v1211_v20, %v1188_v17 }
 0x5fc   : > { %v1269_v12 = vadd.f32 %v1258_v10, %v1212_v11  ;;  %v1237_v13 = vpop.f32.mrf.mxu0  ;;  %v1260_v14 = vpop.f32.mrf.mxu1 }
 0x5fd   : > { %v1261_v15 = vadd.f32 %v1260_v14, %v1237_v13 }
 0x5fe   : > { %1270 = vadd.xlane.f32.xlu0 %v1269_v12 }
 0x601   : > { %v1191_v58 = vpop.f32.mrf.mxu2  ;;  %v1214_v60 = vpop.f32.mrf.mxu3 }
 0x602   : > { %v1215_v16 = vadd.f32 %v1214_v60, %v1191_v58 }
 0x604   : > { %v1272_v18 = vadd.f32 %v1261_v15, %v1215_v16 }
 0x606   : > { %1273 = vadd.xlane.f32.xlu1 %v1272_v18 }
 0x671   : > { %v1271_v21 = vpop.xlane.xlu0 %1270 }
 0x679   : > { %v1274_v19 = vpop.xlane.xlu1 %1273 }
 0x67a   : > { %1295 = vmatpush.msra.mxu3 %v1274_v19 }
 0x67c   : > { %1296 = vmatpush.msra.mxu3 %v1271_v21 }
 0x67d   : > { %1640 = vmatmul.msk.f32.vlgmr.msra.gmra.mxu3 %vm2567_vm5, %v2207_v63 }
 0x685   : > { %1641 = vmatmul.msk.f32.gmra.mxu3 %vm2568_vm6, %v2211_v1 }
 0x700   : > { %v1298_v22 = vpop.f32.mrf.mxu3 }
 0x708   : > { %v1301_v23 = vpop.f32.mrf.mxu3 }
 0x709   : > { %1311 = vperm.xlu2 %1735, %v1301_v23  }
 0x711   : > { %1306 = vperm.xlu2 %1735, %v1298_v22  }
 0x763   : > { %v1312_v24 = vpop.permute.xlu2 %1311 }
 0x764   : > { %v2456_v25 = vsub.f32 %v1215_v16, %v1312_v24  ;;  %v2458_v6 = vsub.f32 %v1261_v15, %v1312_v24 }
 0x766   : > { %v1320_v7 = vmul.f32 %v2456_v25, %v2456_v25  ;;  %v1321_v56 = vmul.f32 %v2458_v6, %v2458_v6 }
 0x768   : > { %v1325_v61 = vadd.f32 %v1321_v56, %v1320_v7 }
 0x76a   : > { %1326 = vadd.xlane.f32.xlu2 %v1325_v61 }
 0x76b   : > { %v1307_v26 = vpop.permute.xlu2 %1306 }
 0x76c   : > { %v1314_v28 = vsub.f32 %v1212_v11, %v1307_v26  ;;  %v1315_v29 = vsub.f32 %v1258_v10, %v1307_v26 }
 0x76e   : > { %v1318_v30 = vmul.f32 %v1314_v28, %v1314_v28  ;;  %v1319_v31 = vmul.f32 %v1315_v29, %v1315_v29 }
 0x770   : > { %v1322_v32 = vadd.f32 %v1319_v31, %v1318_v30 }
 0x772   : > { %1323 = vadd.xlane.f32.xlu1 %v1322_v32 }
 0x782   : > { %1389 = vperm.xlu2 %1735, %v1265_v33  }
 0x7dd   : > { %v1327_v34 = vpop.xlane.xlu2 %1326 }
 0x7de   : > { %1342 = vmatpush.msra.mxu1 %v1327_v34 }
 0x7e5   : > { %v1324_v35 = vpop.xlane.xlu1 %1323  ;;  %v1390_v5 = vpop.permute.xlu2 %1389 }
 0x7e6   : > { %1343 = vmatpush.msra.mxu1 %v1324_v35 }
 0x7e7   : > { %1642 = vmatmul.msk.f32.vlgmr.msra.gmra.mxu1 %vm2569_vm7, %v2207_v63  ;;  %v1263_v63 = vld [vmem:[%s2544_s5] sm:$0xff] }
 0x7ef   : > { %1643 = vmatmul.msk.f32.gmra.mxu1 %vm2570_vm8, %v2211_v1 }
 0x864   : > { %v1345_v36 = vpop.f32.mrf.mxu1 }
 0x865   : > { %v1346_v59 = vadd.f32 1e-05, %v1345_v36 }
 0x867   : > { %1757 = vrsqrt.f32 %v1346_v59  ;;  %vm1357_vm9 = vweird.f32 %v1346_v59 }
 0x86c   : > { %v1348_v62 = vpop.f32.mrf.mxu1 }
 0x86d   : > { %v1758_v37 = vpop.eup %1757  ;;  %v1349_v38 = vadd.f32 1e-05, %v1348_v62 }
 0x86e   : > { %v1352_v40 = vmul.f32 %v1758_v37, %v1346_v59  ;;  %vm1358_vm10 = vweird.f32 %v1758_v37 }
 0x86f   : > { %1759 = vrsqrt.f32 %v1349_v38  ;;  %vm1359_vm11 = vmor %vm1357_vm9, %vm1358_vm10  ;;  %vm1367_vm13 = vweird.f32 %v1349_v38 }
 0x870   : > { %v1353_v41 = vmul.f32 %v1758_v37, %v1352_v40 }
 0x872   : > { %v1354_v42 = vmul.f32 0.5, %v1353_v41 }
 0x874   : > { %v1355_v43 = vsub.f32 1.5, %v1354_v42 }
 0x875   : > { %v1760_v44 = vpop.eup %1759 }
 0x876   : > { %v1362_v45 = vmul.f32 %v1760_v44, %v1349_v38  ;;  %v1356_v1 = vmul.f32 %v1758_v37, %v1355_v43  ;;  %vm1368_vm12 = vweird.f32 %v1760_v44 }
 0x877   : > { %vm1369_vm14 = vmor %vm1367_vm13, %vm1368_vm12 }
 0x878   : > { %v1363_v46 = vmul.f32 %v1760_v44, %v1362_v45  ;;  %v1360_v47 = vsel %vm1359_vm11, %v1758_v37, %v1356_v1 }
 0x879   : > { %v1371_v48 = vmul.f32 %v1360_v47, %v1263_v63 }
 0x87a   : > { %v1364_v49 = vmul.f32 0.5, %v1363_v46 }
 0x87b   : > { %1375 = vperm.xlu0 %1734, %v1371_v48  }
 0x87c   : > { %v1365_v39 = vsub.f32 1.5, %v1364_v49 }
 0x87e   : > { %v1366_v52 = vmul.f32 %v1760_v44, %v1365_v39 }
 0x880   : > { %v1370_v54 = vsel %vm1369_vm14, %v1760_v44, %v1366_v52 }
 0x881   : > { %v1372_v57 = vmul.f32 %v1370_v54, %v1264_v53 }
 0x883   : > { %1380 = vperm.xlu1 %1736, %v1372_v57   ;;  %1394 = vperm.xlu0 %1734, %v1266_v55  }
 0x8ed   : > { %v1376_v2 = vpop.permute.xlu0 %1375 }
 0x8ee   : > { %v1383_v3 = vmul.f32 %v1376_v2, %v1314_v28  ;;  %v1384_v4 = vmul.f32 %v1376_v2, %v1315_v29 }
 0x8f0   : > { %v1397_v8 = vadd.f32 %v1390_v5, %v1383_v3  ;;  %v1398_v9 = vadd.f32 %v1390_v5, %v1384_v4 }
 0x8f2   : > { %v1644_v27 = vmul.f32 -1.442695, %v1397_v8  ;;  %v1645_v0 = vmul.f32 -1.442695, %v1398_v9 }
 0x8f4   : > { %1761 = vpow2.f32 %v1644_v27 }
 0x8f5   : > { %1763 = vpow2.f32 %v1645_v0  ;;  %v1381_v50 = vpop.permute.xlu1 %1380  ;;  %v1395_v17 = vpop.permute.xlu0 %1394 }
 0x8f6   : > { %v1385_v51 = vmul.f32 %v1381_v50, %v2456_v25  ;;  %v1386_v10 = vmul.f32 %v1381_v50, %v2458_v6 }
 0x8f8   : > { %v2482_v20 = vadd.f32 %v1395_v17, %v1385_v51  ;;  %v2484_v11 = vadd.f32 %v1395_v17, %v1386_v10 }
 0x8fa   : > { %v1762_v12 = vpop.eup %1761  ;;  %v1646_v13 = vmul.f32 -1.442695, %v2482_v20  ;;  %v1647_v58 = vmul.f32 -1.442695, %v2484_v11 }
 0x8fb   : > { %v1764_v14 = vpop.eup %1763  ;;  %v1413_v15 = vadd.f32 1.0, %v1762_v12 }
 0x8fc   : > { %v1414_v60 = vadd.f32 1.0, %v1764_v14  ;;  %1765 = vpow2.f32 %v1646_v13 }
 0x8fd   : > { %1767 = vrcp.f32 %v1413_v15  ;;  %v1426_v7 = vand.u32 2147483647, %v1413_v15  ;;  %v1428_v56 = vand.u32 2147483648, %v1413_v15  ;;  %vm1422_vm1 = vweird.f32 %v1413_v15 }
 0x8fe   : > { %1769 = vrcp.f32 %v1414_v60  ;;  %v1443_v28 = vand.u32 2147483648, %v1414_v60  ;;  %v1441_v30 = vand.u32 2147483647, %v1414_v60  ;;  %vm1437_vm3 = vweird.f32 %v1414_v60 }
 0x8ff   : > { %1771 = vpow2.f32 %v1647_v58  ;;  %v1429_v33 = vor.u32 1.1754944e-38, %v1428_v56  ;;  %vm1427_vm4 = vcmp.eq.f32.partialorder %v1426_v7, 8.507059e+37 }
 0x900   : > { %v1444_v36 = vor.u32 1.1754944e-38, %v1443_v28  ;;  %vm1442_vm6 = vcmp.eq.f32.partialorder %v1441_v30, 8.507059e+37 }
 0x902   : > { %v1766_v16 = vpop.eup %1765 }
 0x903   : > { %v1768_v18 = vpop.eup %1767  ;;  %v1415_v19 = vadd.f32 1.0, %v1766_v16 }
 0x904   : > { %v1770_v21 = vpop.eup %1769  ;;  %v1418_v22 = vmul.f32 %v1768_v18, %v1413_v15  ;;  %vm1423_vm15 = vweird.f32 %v1768_v18 }
 0x905   : > { %v1772_v23 = vpop.eup %1771  ;;  %v1433_v24 = vmul.f32 %v1770_v21, %v1414_v60  ;;  %1773 = vrcp.f32 %v1415_v19  ;;  %vm1438_vm0 = vweird.f32 %v1770_v21  ;;  %vm1424_vm2 = vmor %vm1422_vm1, %vm1423_vm15  ;;  %v1458_v44 = vand.u32 2147483648, %v1415_v19 }
 0x906   : > { %v1419_v25 = vsub.f32 1.0, %v1418_v22  ;;  %v2488_v6 = vadd.f32 1.0, %v1772_v23  ;;  %vm1439_vm5 = vmor %vm1437_vm3, %vm1438_vm0  ;;  %v1456_v1 = vand.u32 2147483647, %v1415_v19  ;;  %vm1452_vm8 = vweird.f32 %v1415_v19 }
 0x907   : > { %v1434_v61 = vsub.f32 1.0, %v1433_v24  ;;  %v1459_v49 = vor.u32 1.1754944e-38, %v1458_v44 }
 0x908   : > { %v1420_v26 = vmul.f32 %v1768_v18, %v1419_v25  ;;  %1775 = vrcp.f32 %v2488_v6  ;;  %v1473_v48 = vand.u32 2147483648, %v2488_v6  ;;  %v1471_v52 = vand.u32 2147483647, %v2488_v6 }
 0x909   : > { %v1435_v29 = vmul.f32 %v1770_v21, %v1434_v61  ;;  %vm1457_vm11 = vcmp.eq.f32.partialorder %v1456_v1, 8.507059e+37  ;;  %vm1467_vm12 = vweird.f32 %v2488_v6 }
 0x90a   : > { %v1421_v31 = vadd.f32 %v1768_v18, %v1420_v26  ;;  %v1474_v57 = vor.u32 1.1754944e-38, %v1473_v48  ;;  %vm1472_vm14 = vcmp.eq.f32.partialorder %v1471_v52, 8.507059e+37 }
 0x90b   : > { %v1774_v32 = vpop.eup %1773  ;;  %v1436_v34 = vadd.f32 %v1770_v21, %v1435_v29 }
 0x90c   : > { %v1425_v35 = vsel %vm1424_vm2, %v1768_v18, %v1421_v31  ;;  %v1448_v59 = vmul.f32 %v1774_v32, %v1415_v19  ;;  %vm1453_vm7 = vweird.f32 %v1774_v32 }
 0x90d   : > { %v1430_v62 = vsel %vm1427_vm4, %v1429_v33, %v1425_v35  ;;  %v1440_v37 = vsel %vm1439_vm5, %v1770_v21, %v1436_v34  ;;  %vm1454_vm10 = vmor %vm1452_vm8, %vm1453_vm7 }
 0x90e   : > { %v1776_v38 = vpop.eup %1775  ;;  %v1445_v40 = vsel %vm1442_vm6, %v1444_v36, %v1440_v37  ;;  %v1477_v41 = vmul.f32 %v1430_v62, %v1397_v8  ;;  %v1449_v42 = vsub.f32 1.0, %v1448_v59 }
 0x90f   : > { %v1478_v43 = vmul.f32 %v1445_v40, %v1398_v9  ;;  %v1463_v45 = vmul.f32 %v1776_v38, %v2488_v6  ;;  %vm1468_vm9 = vweird.f32 %v1776_v38 }
 0x910   : > { %1481 = vst [vmem:[%s2493_s29] sm:$0xff] %v1477_v41  ;;  %v1450_v63 = vmul.f32 %v1774_v32, %v1449_v42  ;;  %vm1469_vm13 = vmor %vm1467_vm12, %vm1468_vm9 }
 0x911   : > { %1482 = vst [vmem:[%s2493_s29 + $0x8] sm:$0xff] %v1478_v43  ;;  %v1464_v46 = vsub.f32 1.0, %v1463_v45 }
 0x912   : > { %v1451_v47 = vadd.f32 %v1774_v32, %v1450_v63 }
 0x913   : > { %v1465_v39 = vmul.f32 %v1776_v38, %v1464_v46 }
 0x914   : > { %v1455_v53 = vsel %vm1454_vm10, %v1774_v32, %v1451_v47 }
 0x915   : > { %v1460_v54 = vsel %vm1457_vm11, %v1459_v49, %v1455_v53  ;;  %v1466_v55 = vadd.f32 %v1776_v38, %v1465_v39 }
 0x916   : > { %v1479_v2 = vmul.f32 %v1460_v54, %v2482_v20 }
 0x917   : > { %v1470_v3 = vsel %vm1469_vm13, %v1776_v38, %v1466_v55 }
 0x918   : > { %v1475_v4 = vsel %vm1472_vm14, %v1474_v57, %v1470_v3  ;;  %1483 = vst [vmem:[%s2493_s29 + $0x10] sm:$0xff] %v1479_v2 }
 0x919   : > { %v1480_v5 = vmul.f32 %v1475_v4, %v2484_v11 }
 0x91b   : > { %1484 = vst [vmem:[%s2493_s29 + $0x18] sm:$0xff] %v1480_v5 }
 0x91c   : > { %1894 = shalt.err (!%p1891_p9)
}
 0x91d   : > { %s1952_s19 = smov 256  }
 0x91e   : > { %1665 = dma.vmem_to_hbm [thread:$0]  (%p2072_p4), %s1499_s16, 512, %s1501_s18, %s1486_s26, %s1952_s19, %s1952_s19, %s1943_s11  }
 0x91f PF: > { %s1515_s29 = sand.u32 1, %s1925_s30   ;;  %p2571_p10 = scmp.ge.s32.totalorder %s1937_s12, 2 }
 0x920   : > { %s1516_s22 = scalar_lea.sflag [#allocation6], %s1515_s29 }
 0x921   : > { %p1679_p13 = pnand %p2571_p10, %p2076_p6 }
 0x923   : > { %p1680_p11 = pneg %p1679_p13 }
 0x925   : > { %1920 = dma.done.wait (%p1680_p11), %s1516_s22, 512  }
 0x926   : > { %1922 = vsyncadd (%p1680_p11), %s1516_s22, 4294966784  ;;  %s2572_s1 = sld [smem:[#allocation14_spill]]  ;;  %p23_p0 = scmp.ge.s32.totalorder %s2046_s28, 4  }
 0x927   : > { %s2573_s11 = sld [smem:[#allocation15_spill]]  ;;  %s2574_s30 = smov %s1929_s10 }
 0x928   : > { %s2576_s12 = smov %s2046_s28  ;;  %25 = sbr.rel (!%p23_p0) target bundleno = 9 (0x9), region = 117 }
 0x92c   : > { %s2575_s10 = smov %s2572_s1 }
 0x92d   :  { %1522 = vsyncpa [#allocation5], 1 }
 0x92e   :  { %1524 = vsyncpa [#allocation5 + $0x1], 1 }
 0x92f   :  { %1525 = vsyncpa [#allocation8], 1 }
 0x930   :  { %1526 = vsyncpa [#allocation6], 1 }
 0x931   :  { %1528 = vsyncpa [#allocation6 + $0x1], 1 }

</bundles_post_ra>
